<compile_context>
chip_gen: v7x
topology: tpu7x:2x2x1
jax: 0.10.0
libtpu: 0.0.40
codegen_flags: <defaults>
</compile_context>

<pallas_src>
import jax
import jax.numpy as jnp
from jax.experimental import pallas as pl
from jax.experimental.pallas import tpu as pltpu


def _round_up(x: int, m: int) -> int:
    return (x + m - 1) // m * m


# --------------------------------------------------------------------------- #
# Kernels                                                                      #
# --------------------------------------------------------------------------- #

def _make_conv_lin_kernel(inv_hw: float, store_features: bool):
    """Fused per-(batch, hw-tile) kernel:

         f_i  = relu(patches_i @ W + b)            for the 4 images i = 1..4
         d    = (f_1 - f_2) - (f_3 - f_4)
         lin += sum_{hw,c} lin_w[c] * d^2 * inv_hw  (resident accumulator)

       Optionally also stores the f_i feature tiles (next level's input).
    """

    def _body(a_refs, w_ref, b_ref, lw_ref, f_refs, lin_ref):
        t = pl.program_id(1)

        @pl.when(t == 0)
        def _init():
            lin_ref[...] = jnp.zeros_like(lin_ref)

        w = w_ref[...]                       # (K, C)  bf16 or f32
        b = b_ref[...]                       # (1, C)  f32
        feats = []
        for i in range(4):
            f = jnp.dot(a_refs[i][...], w, preferred_element_type=jnp.float32)
            f = jnp.maximum(f + b, 0.0)      # (thw, C) f32
            if store_features:
                f_refs[i][...] = f.astype(f_refs[i].dtype)
            feats.append(f)

        d = (feats[0] - feats[1]) - (feats[2] - feats[3])        # (thw, C) f32
        part = jnp.sum((d * d) * lw_ref[...], keepdims=True)     # (1, 1)
        lin_ref[...] = lin_ref[...] + part * inv_hw

    if store_features:
        def kernel(a1, a2, a3, a4, w, b, lw, f1, f2, f3, f4, lin):
            _body((a1, a2, a3, a4), w, b, lw, (f1, f2, f3, f4), lin)
    else:
        def kernel(a1, a2, a3, a4, w, b, lw, lin):
            _body((a1, a2, a3, a4), w, b, lw, None, lin)
    return kernel


def _make_mse_kernel(inv_n: float):
    """Tiled reduction: o += sum(((x1-x2)-(y1-y2))^2) * inv_n per lane-dense tile."""

    def kernel(x1_ref, x2_ref, y1_ref, y2_ref, o_ref):
        @pl.when(pl.program_id(0) == 0)
        def _init():
            o_ref[...] = jnp.zeros_like(o_ref)

        d = (x1_ref[...] - x2_ref[...]) - (y1_ref[...] - y2_ref[...])
        o_ref[...] = o_ref[...] + jnp.sum(d * d, keepdims=True) * inv_n

    return kernel


# --------------------------------------------------------------------------- #
# Wrappers                                                                     #
# --------------------------------------------------------------------------- #

def _im2col_patches(x, kh, kw, stride, pad):
    """x: (B, H, W, C) NHWC -> patches (B, Ho*Wo, kh*kw*C), plus (Ho, Wo).

    Host-side im2col (XLA slices/concat, pure data movement).  A per-tile
    in-kernel im2col would cut HBM read traffic further (perf follow-up)."""
    B, H, W, C = x.shape
    xp = jnp.pad(x, ((0, 0), (pad, pad), (pad, pad), (0, 0)))
    Ho = (H + 2 * pad - kh) // stride + 1
    Wo = (W + 2 * pad - kw) // stride + 1
    cols = []
    for i in range(kh):
        for j in range(kw):
            cols.append(xp[:, i:i + stride * Ho:stride, j:j + stride * Wo:stride, :])
    patches = jnp.concatenate(cols, axis=-1)            # (B, Ho, Wo, kh*kw*C)
    return patches.reshape(B, Ho * Wo, kh * kw * C), (Ho, Wo)


def _conv_relu_lin_level(imgs4, w_hwio, bias, lin_w, *, store_features,
                         gemm_dtype=jnp.bfloat16, hw_tile=512):
    """One LPIPS level, fully fused in a single pallas_call:
       3x3 / stride-2 / pad-1 conv + bias + ReLU for all four images, plus the
       per-batch lin-reduced squared feature-difference term.

       Returns (list of 4 NHWC feature maps or None, (B,) lin term)."""
    KH, KW, Cin, Cout = w_hwio.shape
    B = imgs4[0].shape[0]
    K = KH * KW * Cin

    pats, HoWo = [], None
    for x in imgs4:
        p, HoWo = _im2col_patches(x, KH, KW, stride=2, pad=1)
        pats.append(p)
    Ho, Wo = HoWo
    P = Ho * Wo

    # hw tile: multiple of 8 sublanes; pad P so every tile is full (padded rows
    # are all-zero patches -> identical relu(bias) for all 4 images -> zero diff).
    thw = min(_round_up(hw_tile, 8), _round_up(P, 8))
    P_pad = _round_up(P, thw)
    T = P_pad // thw

    def prep(p):
        p = jnp.pad(p, ((0, 0), (0, P_pad - P), (0, 0)))
        return p.astype(gemm_dtype)

    pats = [prep(p) for p in pats]
    wm = w_hwio.reshape(K, Cout).astype(gemm_dtype)
    bm = bias.reshape(1, Cout).astype(jnp.float32)
    lw = lin_w.reshape(1, Cout).astype(jnp.float32)

    a_spec = pl.BlockSpec((None, thw, K), lambda b_, t: (b_, t, 0))
    f_spec = pl.BlockSpec((None, thw, Cout), lambda b_, t: (b_, t, 0))
    w_spec = pl.BlockSpec((K, Cout), lambda b_, t: (0, 0))          # resident
    v_spec = pl.BlockSpec((1, Cout), lambda b_, t: (0, 0))          # resident
    lin_spec = pl.BlockSpec((None, 8, 128), lambda b_, t: (b_, 0, 0))  # accum

    lin_shape = jax.ShapeDtypeStruct((B, 8, 128), jnp.float32)
    if store_features:
        feat_shape = jax.ShapeDtypeStruct((B, P_pad, Cout), gemm_dtype)
        out_shape = (feat_shape,) * 4 + (lin_shape,)
        out_specs = (f_spec,) * 4 + (lin_spec,)
    else:
        out_shape = lin_shape
        out_specs = lin_spec

    kernel = _make_conv_lin_kernel(inv_hw=1.0 / float(P),
                                   store_features=store_features)

    outs = pl.pallas_call(
        kernel,
        out_shape=out_shape,
        grid=(B, T),
        in_specs=[a_spec] * 4 + [w_spec, v_spec, v_spec],
        out_specs=out_specs,
        compiler_params=pltpu.CompilerParams(
            dimension_semantics=("parallel", "arbitrary")),
    )(*pats, wm, bm, lw)

    if store_features:
        f1, f2, f3, f4, lin = outs
        feats = [f[:, :P, :].reshape(B, Ho, Wo, Cout) for f in (f1, f2, f3, f4)]
        return feats, lin[:, 0, 0]
    return None, outs[:, 0, 0]


def mse_loss(x1, x2, y1, y2, *, rows_tile=512):
    """mean(((x1-x2)-(y1-y2))**2) as a tiled, lane-dense grid reduction."""
    n = x1.size
    lanes = 128
    rows = _round_up(pl.cdiv(n, lanes), 8)
    tr = min(_round_up(rows_tile, 8), rows)
    rows_pad = _round_up(rows, tr)
    T = rows_pad // tr

    def prep(x):
        f = x.reshape(-1).astype(jnp.float32)
        f = jnp.pad(f, (0, rows_pad * lanes - n))       # zero pad -> zero diff
        return f.reshape(rows_pad, lanes)

    spec = pl.BlockSpec((tr, lanes), lambda t: (t, 0))
    out = pl.pallas_call(
        _make_mse_kernel(1.0 / float(n)),
        out_shape=jax.ShapeDtypeStruct((8, 128), jnp.float32),
        grid=(T,),
        in_specs=[spec] * 4,
        out_specs=pl.BlockSpec((8, 128), lambda t: (0, 0)),
        compiler_params=pltpu.CompilerParams(
            dimension_semantics=("arbitrary",)),
    )(prep(x1), prep(x2), prep(y1), prep(y2))
    return out[0, 0]


def fdb_loss(x1, x2, y1, y2, params, *, gemm_dtype=jnp.bfloat16):
    """FDBLoss.forward: L2Loss(x1-x2, y1-y2) + LPIPSDiffLoss(x1,x2,y1,y2) -> (B,)."""
    mse = mse_loss(x1, x2, y1, y2)

    imgs = [x1, x2, y1, y2]
    feats, lin1 = _conv_relu_lin_level(
        imgs, params["w1"], params["b1"], params["lins"][0],
        store_features=True, gemm_dtype=gemm_dtype)
    _, lin2 = _conv_relu_lin_level(
        feats, params["w2"], params["b2"], params["lins"][1],
        store_features=False, gemm_dtype=gemm_dtype)

    # scalar + (B,) broadcast, same as the torch module
    return mse + lin1 + lin2


# --------------------------------------------------------------------------- #
# Reference (pure JAX, f32) + example                                          #
# --------------------------------------------------------------------------- #

def _reference(x1, x2, y1, y2, params):
    def conv(x, w, b):
        y = jax.lax.conv_general_dilated(
            x, w, window_strides=(2, 2), padding=[(1, 1), (1, 1)],
            dimension_numbers=("NHWC", "HWIO", "NHWC"))
        return jnp.maximum(y + b, 0.0)

    def net(x):
        f1 = conv(x, params["w1"], params["b1"])
        f2 = conv(f1, params["w2"], params["b2"])
        return [f1, f2]

    fx1, fx2, fy1, fy2 = net(x1), net(x2), net(y1), net(y2)
    lp = 0.0
    for lvl, lw in enumerate(params["lins"]):
        d = (fx1[lvl] - fx2[lvl]) - (fy1[lvl] - fy2[lvl])
        lp = lp + jnp.mean(jnp.sum(d * d * lw, axis=-1), axis=(1, 2))
    mse = jnp.mean(((x1 - x2) - (y1 - y2)) ** 2)
    return mse + lp


def _init_params(key):
    k1, k2, k3, k4, k5, k6 = jax.random.split(key, 6)
    C1, C2 = 8, 16
    return {
        "w1": 0.1 * jax.random.normal(k1, (3, 3, 3, C1), jnp.float32),
        "b1": 0.1 * jax.random.normal(k2, (C1,), jnp.float32),
        "w2": 0.1 * jax.random.normal(k3, (3, 3, C1, C2), jnp.float32),
        "b2": 0.1 * jax.random.normal(k4, (C2,), jnp.float32),
        # NetLinLayer: 1x1 conv, 1 output channel, no bias -> weight (C,)
        "lins": [0.1 * jax.random.normal(k5, (C1,), jnp.float32),
                 0.1 * jax.random.normal(k6, (C2,), jnp.float32)],
    }


if __name__ == "__main__":
    key = jax.random.PRNGKey(0)
    kx1, kx2, ky1, ky2, kp = jax.random.split(key, 5)
    B, H, W, C = 2, 16, 16, 3                           # NHWC images
    x1 = jax.random.normal(kx1, (B, H, W, C), jnp.float32)
    x2 = jax.random.normal(kx2, (B, H, W, C), jnp.float32)
    y1 = jax.random.normal(ky1, (B, H, W, C), jnp.float32)
    y2 = jax.random.normal(ky2, (B, H, W, C), jnp.float32)
    params = _init_params(kp)

    loss = jax.jit(fdb_loss)(x1, x2, y1, y2, params)
    loss = jax.block_until_ready(loss)
    assert loss.shape == (B,) and loss.dtype == jnp.float32

    ref = _reference(x1, x2, y1, y2, params)
    assert jnp.allclose(loss, ref, rtol=5e-2, atol=5e-3), (loss, ref)

    print("KERNEL_OK")
</pallas_src>

<mosaic_0001>
module attributes {stable_mosaic.version = 11 : i64} {
  func.func @kernel(%arg0: i32, %arg1: memref<16x128xf32, #tpu.memory_space<vmem>>, %arg2: memref<16x128xf32, #tpu.memory_space<vmem>>, %arg3: memref<16x128xf32, #tpu.memory_space<vmem>>, %arg4: memref<16x128xf32, #tpu.memory_space<vmem>>, %arg5: memref<8x128xf32, #tpu.memory_space<vmem>>) attributes {dimension_semantics = [#tpu.dimension_semantics<arbitrary>], iteration_bounds = array<i64: 1>, scalar_prefetch = 0 : i64, scratch_operands = 0 : i64, tpu.core_type = #tpu.core_type<tc>, window_params = [{transform_indices = @transform_0, window_bounds = array<i64: 16, 128>}, {transform_indices = @transform_1, window_bounds = array<i64: 16, 128>}, {transform_indices = @transform_2, window_bounds = array<i64: 16, 128>}, {transform_indices = @transform_3, window_bounds = array<i64: 16, 128>}, {pipeline_mode = #tpu.pipeline_mode<synchronous>, transform_indices = @transform_4, window_bounds = array<i64: 8, 128>}]} {
    %c0_i32 = arith.constant 0 : i32
    %0 = arith.cmpi eq, %arg0, %c0_i32 : i32
    %1 = arith.extui %0 : i1 to i32
    %c0_i32_0 = arith.constant 0 : i32
    %2 = arith.cmpi ne, %1, %c0_i32_0 : i32
    scf.if %2 {
      %cst_13 = arith.constant 0.000000e+00 : f32
      %22 = vector.broadcast %cst_13 : f32 to vector<8x128xf32>
      %c0_14 = arith.constant 0 : index
      %c0_15 = arith.constant 0 : index
      %23 = vector.load %arg5[%c0_14, %c0_15] : memref<8x128xf32, #tpu.memory_space<vmem>>, vector<8x128xf32>
      tpu.vector_store %arg5[%c0_14, %c0_15], %22 {strides = array<i32>} : memref<8x128xf32, #tpu.memory_space<vmem>>, vector<8x128xf32>,
    } else {
    }
    %c0 = arith.constant 0 : index
    %c0_1 = arith.constant 0 : index
    %3 = vector.load %arg1[%c0, %c0_1] : memref<16x128xf32, #tpu.memory_space<vmem>>, vector<16x128xf32>
    %c0_2 = arith.constant 0 : index
    %c0_3 = arith.constant 0 : index
    %4 = vector.load %arg2[%c0_2, %c0_3] : memref<16x128xf32, #tpu.memory_space<vmem>>, vector<16x128xf32>
    %5 = arith.subf %3, %4 : vector<16x128xf32>
    %c0_4 = arith.constant 0 : index
    %c0_5 = arith.constant 0 : index
    %6 = vector.load %arg3[%c0_4, %c0_5] : memref<16x128xf32, #tpu.memory_space<vmem>>, vector<16x128xf32>
    %c0_6 = arith.constant 0 : index
    %c0_7 = arith.constant 0 : index
    %7 = vector.load %arg4[%c0_6, %c0_7] : memref<16x128xf32, #tpu.memory_space<vmem>>, vector<16x128xf32>
    %8 = arith.subf %6, %7 : vector<16x128xf32>
    %9 = arith.subf %5, %8 : vector<16x128xf32>
    %c0_8 = arith.constant 0 : index
    %c0_9 = arith.constant 0 : index
    %10 = vector.load %arg5[%c0_8, %c0_9] : memref<8x128xf32, #tpu.memory_space<vmem>>, vector<8x128xf32>
    %11 = arith.mulf %9, %9 : vector<16x128xf32>
    %12 = vector.shape_cast %11 : vector<16x128xf32> to vector<1x16x128xf32>
    %cst = arith.constant dense<0.000000e+00> : vector<1xf32>
    %13 = vector.multi_reduction <add>, %12, %cst [1, 2] : vector<1x16x128xf32> to vector<1xf32>
    %14 = vector.shape_cast %13 : vector<1xf32> to vector<1x1x1xf32>
    %15 = vector.extract %14[0, 0, 0] : f32 from vector<1x1x1xf32>
    %16 = vector.broadcast %15 : f32 to vector<1x1xf32>
    %cst_10 = arith.constant 6.51041686E-4 : f32
    %17 = vector.broadcast %cst_10 : f32 to vector<1x1xf32>
    %18 = arith.mulf %16, %17 : vector<1x1xf32>
    %19 = vector.broadcast %18 : vector<1x1xf32> to vector<8x128xf32>
    %20 = arith.addf %10, %19 : vector<8x128xf32>
    %c0_11 = arith.constant 0 : index
    %c0_12 = arith.constant 0 : index
    %21 = vector.load %arg5[%c0_11, %c0_12] : memref<8x128xf32, #tpu.memory_space<vmem>>, vector<8x128xf32>
    tpu.vector_store %arg5[%c0_11, %c0_12], %20 {strides = array<i32>} : memref<8x128xf32, #tpu.memory_space<vmem>>, vector<8x128xf32>,
    return
  }
  func.func @transform_0(%arg0: i32) -> (i32, i32) {
    %c0_i32 = arith.constant 0 : i32
    %c0_i32_0 = arith.constant 0 : i32
    return %arg0, %c0_i32 : i32, i32
  }
  func.func @transform_1(%arg0: i32) -> (i32, i32) {
    %c0_i32 = arith.constant 0 : i32
    %c0_i32_0 = arith.constant 0 : i32
    return %arg0, %c0_i32 : i32, i32
  }
  func.func @transform_2(%arg0: i32) -> (i32, i32) {
    %c0_i32 = arith.constant 0 : i32
    %c0_i32_0 = arith.constant 0 : i32
    return %arg0, %c0_i32 : i32, i32
  }
  func.func @transform_3(%arg0: i32) -> (i32, i32) {
    %c0_i32 = arith.constant 0 : i32
    %c0_i32_0 = arith.constant 0 : i32
    return %arg0, %c0_i32 : i32, i32
  }
  func.func @transform_4(%arg0: i32) -> (i32, i32) {
    %c0_i32 = arith.constant 0 : i32
    %c0_i32_0 = arith.constant 0 : i32
    %c0_i32_1 = arith.constant 0 : i32
    return %c0_i32, %c0_i32_0 : i32, i32
  }
}

module attributes {stable_mosaic.version = 11 : i64} {
  func.func @kernel(%arg0: i32, %arg1: i32, %arg2: memref<1x64x27xbf16, #tpu.memory_space<vmem>>, %arg3: memref<1x64x27xbf16, #tpu.memory_space<vmem>>, %arg4: memref<1x64x27xbf16, #tpu.memory_space<vmem>>, %arg5: memref<1x64x27xbf16, #tpu.memory_space<vmem>>, %arg6: memref<27x8xbf16, #tpu.memory_space<vmem>>, %arg7: memref<1x8xf32, #tpu.memory_space<vmem>>, %arg8: memref<1x8xf32, #tpu.memory_space<vmem>>, %arg9: memref<1x64x8xbf16, #tpu.memory_space<vmem>>, %arg10: memref<1x64x8xbf16, #tpu.memory_space<vmem>>, %arg11: memref<1x64x8xbf16, #tpu.memory_space<vmem>>, %arg12: memref<1x64x8xbf16, #tpu.memory_space<vmem>>, %arg13: memref<1x8x128xf32, #tpu.memory_space<vmem>>) attributes {dimension_semantics = [#tpu.dimension_semantics<parallel>, #tpu.dimension_semantics<arbitrary>], iteration_bounds = array<i64: 2, 1>, scalar_prefetch = 0 : i64, scratch_operands = 0 : i64, tpu.core_type = #tpu.core_type<tc>, window_params = [{transform_indices = @transform_0, window_bounds = array<i64: 1, 64, 27>}, {transform_indices = @transform_1, window_bounds = array<i64: 1, 64, 27>}, {transform_indices = @transform_2, window_bounds = array<i64: 1, 64, 27>}, {transform_indices = @transform_3, window_bounds = array<i64: 1, 64, 27>}, {pipeline_mode = #tpu.pipeline_mode<synchronous>, transform_indices = @transform_4, window_bounds = array<i64: 27, 8>}, {pipeline_mode = #tpu.pipeline_mode<synchronous>, transform_indices = @transform_5, window_bounds = array<i64: 1, 8>}, {pipeline_mode = #tpu.pipeline_mode<synchronous>, transform_indices = @transform_6, window_bounds = array<i64: 1, 8>}, {transform_indices = @transform_7, window_bounds = array<i64: 1, 64, 8>}, {transform_indices = @transform_8, window_bounds = array<i64: 1, 64, 8>}, {transform_indices = @transform_9, window_bounds = array<i64: 1, 64, 8>}, {transform_indices = @transform_10, window_bounds = array<i64: 1, 64, 8>}, {transform_indices = @transform_11, window_bounds = array<i64: 1, 8, 128>}]} {
    %c0_i32 = arith.constant 0 : i32
    %0 = arith.cmpi eq, %arg1, %c0_i32 : i32
    %1 = arith.extui %0 : i1 to i32
    %c0_i32_0 = arith.constant 0 : i32
    %2 = arith.cmpi ne, %1, %c0_i32_0 : i32
    scf.if %2 {
      %cst_45 = arith.constant 0.000000e+00 : f32
      %70 = vector.broadcast %cst_45 : f32 to vector<8x128xf32>
      %c0_46 = arith.constant 0 : index
      %c0_47 = arith.constant 0 : index
      %c0_48 = arith.constant 0 : index
      %71 = vector.load %arg13[%c0_46, %c0_47, %c0_48] : memref<1x8x128xf32, #tpu.memory_space<vmem>>, vector<1x8x128xf32>
      %72 = vector.shape_cast %71 : vector<1x8x128xf32> to vector<8x128xf32>
      %73 = vector.shape_cast %70 : vector<8x128xf32> to vector<1x8x128xf32>
      tpu.vector_store %arg13[%c0_46, %c0_47, %c0_48], %73 {strides = array<i32>} : memref<1x8x128xf32, #tpu.memory_space<vmem>>, vector<1x8x128xf32>,
    } else {
    }
    %c0 = arith.constant 0 : index
    %c0_1 = arith.constant 0 : index
    %3 = vector.load %arg6[%c0, %c0_1] : memref<27x8xbf16, #tpu.memory_space<vmem>>, vector<27x8xbf16>
    %c0_2 = arith.constant 0 : index
    %c0_3 = arith.constant 0 : index
    %4 = vector.load %arg7[%c0_2, %c0_3] : memref<1x8xf32, #tpu.memory_space<vmem>>, vector<1x8xf32>
    %c0_4 = arith.constant 0 : index
    %c0_5 = arith.constant 0 : index
    %c0_6 = arith.constant 0 : index
    %5 = vector.load %arg2[%c0_4, %c0_5, %c0_6] : memref<1x64x27xbf16, #tpu.memory_space<vmem>>, vector<1x64x27xbf16>
    %6 = vector.shape_cast %5 : vector<1x64x27xbf16> to vector<64x27xbf16>
    %cst = arith.constant dense<0.000000e+00> : vector<64x8xf32>
    %7 = tpu.matmul %6, %3, %cst {dimension_numbers = #tpu.dot_dimension_numbers<[1], [0], [0], [1], [0, 0, 1, 1], [], []>} : vector<64x27xbf16>, vector<27x8xbf16>, vector<64x8xf32> -> vector<64x8xf32>
    %8 = vector.broadcast %4 : vector<1x8xf32> to vector<64x8xf32>
    %9 = arith.addf %7, %8 : vector<64x8xf32>
    %cst_7 = arith.constant 0.000000e+00 : f32
    %10 = vector.broadcast %cst_7 : f32 to vector<64x8xf32>
    %11 = arith.maximumf %9, %10 : vector<64x8xf32>
    %12 = arith.truncf %11 : vector<64x8xf32> to vector<64x8xbf16>
    %c0_8 = arith.constant 0 : index
    %c0_9 = arith.constant 0 : index
    %c0_10 = arith.constant 0 : index
    %13 = vector.load %arg9[%c0_8, %c0_9, %c0_10] : memref<1x64x8xbf16, #tpu.memory_space<vmem>>, vector<1x64x8xbf16>
    %14 = vector.shape_cast %13 : vector<1x64x8xbf16> to vector<64x8xbf16>
    %15 = vector.shape_cast %12 : vector<64x8xbf16> to vector<1x64x8xbf16>
    tpu.vector_store %arg9[%c0_8, %c0_9, %c0_10], %15 {strides = array<i32>} : memref<1x64x8xbf16, #tpu.memory_space<vmem>>, vector<1x64x8xbf16>,
    %c0_11 = arith.constant 0 : index
    %c0_12 = arith.constant 0 : index
    %c0_13 = arith.constant 0 : index
    %16 = vector.load %arg3[%c0_11, %c0_12, %c0_13] : memref<1x64x27xbf16, #tpu.memory_space<vmem>>, vector<1x64x27xbf16>
    %17 = vector.shape_cast %16 : vector<1x64x27xbf16> to vector<64x27xbf16>
    %cst_14 = arith.constant dense<0.000000e+00> : vector<64x8xf32>
    %18 = tpu.matmul %17, %3, %cst_14 {dimension_numbers = #tpu.dot_dimension_numbers<[1], [0], [0], [1], [0, 0, 1, 1], [], []>} : vector<64x27xbf16>, vector<27x8xbf16>, vector<64x8xf32> -> vector<64x8xf32>
    %19 = vector.broadcast %4 : vector<1x8xf32> to vector<64x8xf32>
    %20 = arith.addf %18, %19 : vector<64x8xf32>
    %cst_15 = arith.constant 0.000000e+00 : f32
    %21 = vector.broadcast %cst_15 : f32 to vector<64x8xf32>
    %22 = arith.maximumf %20, %21 : vector<64x8xf32>
    %23 = arith.truncf %22 : vector<64x8xf32> to vector<64x8xbf16>
    %c0_16 = arith.constant 0 : index
    %c0_17 = arith.constant 0 : index
    %c0_18 = arith.constant 0 : index
    %24 = vector.load %arg10[%c0_16, %c0_17, %c0_18] : memref<1x64x8xbf16, #tpu.memory_space<vmem>>, vector<1x64x8xbf16>
    %25 = vector.shape_cast %24 : vector<1x64x8xbf16> to vector<64x8xbf16>
    %26 = vector.shape_cast %23 : vector<64x8xbf16> to vector<1x64x8xbf16>
    tpu.vector_store %arg10[%c0_16, %c0_17, %c0_18], %26 {strides = array<i32>} : memref<1x64x8xbf16, #tpu.memory_space<vmem>>, vector<1x64x8xbf16>,
    %c0_19 = arith.constant 0 : index
    %c0_20 = arith.constant 0 : index
    %c0_21 = arith.constant 0 : index
    %27 = vector.load %arg4[%c0_19, %c0_20, %c0_21] : memref<1x64x27xbf16, #tpu.memory_space<vmem>>, vector<1x64x27xbf16>
    %28 = vector.shape_cast %27 : vector<1x64x27xbf16> to vector<64x27xbf16>
    %cst_22 = arith.constant dense<0.000000e+00> : vector<64x8xf32>
    %29 = tpu.matmul %28, %3, %cst_22 {dimension_numbers = #tpu.dot_dimension_numbers<[1], [0], [0], [1], [0, 0, 1, 1], [], []>} : vector<64x27xbf16>, vector<27x8xbf16>, vector<64x8xf32> -> vector<64x8xf32>
    %30 = vector.broadcast %4 : vector<1x8xf32> to vector<64x8xf32>
    %31 = arith.addf %29, %30 : vector<64x8xf32>
    %cst_23 = arith.constant 0.000000e+00 : f32
    %32 = vector.broadcast %cst_23 : f32 to vector<64x8xf32>
    %33 = arith.maximumf %31, %32 : vector<64x8xf32>
    %34 = arith.truncf %33 : vector<64x8xf32> to vector<64x8xbf16>
    %c0_24 = arith.constant 0 : index
    %c0_25 = arith.constant 0 : index
    %c0_26 = arith.constant 0 : index
    %35 = vector.load %arg11[%c0_24, %c0_25, %c0_26] : memref<1x64x8xbf16, #tpu.memory_space<vmem>>, vector<1x64x8xbf16>
    %36 = vector.shape_cast %35 : vector<1x64x8xbf16> to vector<64x8xbf16>
    %37 = vector.shape_cast %34 : vector<64x8xbf16> to vector<1x64x8xbf16>
    tpu.vector_store %arg11[%c0_24, %c0_25, %c0_26], %37 {strides = array<i32>} : memref<1x64x8xbf16, #tpu.memory_space<vmem>>, vector<1x64x8xbf16>,
    %c0_27 = arith.constant 0 : index
    %c0_28 = arith.constant 0 : index
    %c0_29 = arith.constant 0 : index
    %38 = vector.load %arg5[%c0_27, %c0_28, %c0_29] : memref<1x64x27xbf16, #tpu.memory_space<vmem>>, vector<1x64x27xbf16>
    %39 = vector.shape_cast %38 : vector<1x64x27xbf16> to vector<64x27xbf16>
    %cst_30 = arith.constant dense<0.000000e+00> : vector<64x8xf32>
    %40 = tpu.matmul %39, %3, %cst_30 {dimension_numbers = #tpu.dot_dimension_numbers<[1], [0], [0], [1], [0, 0, 1, 1], [], []>} : vector<64x27xbf16>, vector<27x8xbf16>, vector<64x8xf32> -> vector<64x8xf32>
    %41 = vector.broadcast %4 : vector<1x8xf32> to vector<64x8xf32>
    %42 = arith.addf %40, %41 : vector<64x8xf32>
    %cst_31 = arith.constant 0.000000e+00 : f32
    %43 = vector.broadcast %cst_31 : f32 to vector<64x8xf32>
    %44 = arith.maximumf %42, %43 : vector<64x8xf32>
    %45 = arith.truncf %44 : vector<64x8xf32> to vector<64x8xbf16>
    %c0_32 = arith.constant 0 : index
    %c0_33 = arith.constant 0 : index
    %c0_34 = arith.constant 0 : index
    %46 = vector.load %arg12[%c0_32, %c0_33, %c0_34] : memref<1x64x8xbf16, #tpu.memory_space<vmem>>, vector<1x64x8xbf16>
    %47 = vector.shape_cast %46 : vector<1x64x8xbf16> to vector<64x8xbf16>
    %48 = vector.shape_cast %45 : vector<64x8xbf16> to vector<1x64x8xbf16>
    tpu.vector_store %arg12[%c0_32, %c0_33, %c0_34], %48 {strides = array<i32>} : memref<1x64x8xbf16, #tpu.memory_space<vmem>>, vector<1x64x8xbf16>,
    %49 = arith.subf %11, %22 : vector<64x8xf32>
    %50 = arith.subf %33, %44 : vector<64x8xf32>
    %51 = arith.subf %49, %50 : vector<64x8xf32>
    %52 = arith.mulf %51, %51 : vector<64x8xf32>
    %c0_35 = arith.constant 0 : index
    %c0_36 = arith.constant 0 : index
    %53 = vector.load %arg8[%c0_35, %c0_36] : memref<1x8xf32, #tpu.memory_space<vmem>>, vector<1x8xf32>
    %54 = vector.broadcast %53 : vector<1x8xf32> to vector<64x8xf32>
    %55 = arith.mulf %52, %54 : vector<64x8xf32>
    %56 = vector.shape_cast %55 : vector<64x8xf32> to vector<1x64x8xf32>
    %cst_37 = arith.constant dense<0.000000e+00> : vector<1xf32>
    %57 = vector.multi_reduction <add>, %56, %cst_37 [1, 2] : vector<1x64x8xf32> to vector<1xf32>
    %58 = vector.shape_cast %57 : vector<1xf32> to vector<1x1x1xf32>
    %59 = vector.extract %58[0, 0, 0] : f32 from vector<1x1x1xf32>
    %60 = vector.broadcast %59 : f32 to vector<1x1xf32>
    %c0_38 = arith.constant 0 : index
    %c0_39 = arith.constant 0 : index
    %c0_40 = arith.constant 0 : index
    %61 = vector.load %arg13[%c0_38, %c0_39, %c0_40] : memref<1x8x128xf32, #tpu.memory_space<vmem>>, vector<1x8x128xf32>
    %62 = vector.shape_cast %61 : vector<1x8x128xf32> to vector<8x128xf32>
    %cst_41 = arith.constant 1.562500e-02 : f32
    %63 = vector.broadcast %cst_41 : f32 to vector<1x1xf32>
    %64 = arith.mulf %60, %63 : vector<1x1xf32>
    %65 = vector.broadcast %64 : vector<1x1xf32> to vector<8x128xf32>
    %66 = arith.addf %62, %65 : vector<8x128xf32>
    %c0_42 = arith.constant 0 : index
    %c0_43 = arith.constant 0 : index
    %c0_44 = arith.constant 0 : index
    %67 = vector.load %arg13[%c0_42, %c0_43, %c0_44] : memref<1x8x128xf32, #tpu.memory_space<vmem>>, vector<1x8x128xf32>
    %68 = vector.shape_cast %67 : vector<1x8x128xf32> to vector<8x128xf32>
    %69 = vector.shape_cast %66 : vector<8x128xf32> to vector<1x8x128xf32>
    tpu.vector_store %arg13[%c0_42, %c0_43, %c0_44], %69 {strides = array<i32>} : memref<1x8x128xf32, #tpu.memory_space<vmem>>, vector<1x8x128xf32>,
    return
  }
  func.func @transform_0(%arg0: i32, %arg1: i32) -> (i32, i32, i32) {
    %c0_i32 = arith.constant 0 : i32
    %c0_i32_0 = arith.constant 0 : i32
    return %arg0, %arg1, %c0_i32 : i32, i32, i32
  }
  func.func @transform_1(%arg0: i32, %arg1: i32) -> (i32, i32, i32) {
    %c0_i32 = arith.constant 0 : i32
    %c0_i32_0 = arith.constant 0 : i32
    return %arg0, %arg1, %c0_i32 : i32, i32, i32
  }
  func.func @transform_2(%arg0: i32, %arg1: i32) -> (i32, i32, i32) {
    %c0_i32 = arith.constant 0 : i32
    %c0_i32_0 = arith.constant 0 : i32
    return %arg0, %arg1, %c0_i32 : i32, i32, i32
  }
  func.func @transform_3(%arg0: i32, %arg1: i32) -> (i32, i32, i32) {
    %c0_i32 = arith.constant 0 : i32
    %c0_i32_0 = arith.constant 0 : i32
    return %arg0, %arg1, %c0_i32 : i32, i32, i32
  }
  func.func @transform_4(%arg0: i32, %arg1: i32) -> (i32, i32) {
    %c0_i32 = arith.constant 0 : i32
    %c0_i32_0 = arith.constant 0 : i32
    %c0_i32_1 = arith.constant 0 : i32
    return %c0_i32, %c0_i32_0 : i32, i32
  }
  func.func @transform_5(%arg0: i32, %arg1: i32) -> (i32, i32) {
    %c0_i32 = arith.constant 0 : i32
    %c0_i32_0 = arith.constant 0 : i32
    %c0_i32_1 = arith.constant 0 : i32
    return %c0_i32, %c0_i32_0 : i32, i32
  }
  func.func @transform_6(%arg0: i32, %arg1: i32) -> (i32, i32) {
    %c0_i32 = arith.constant 0 : i32
    %c0_i32_0 = arith.constant 0 : i32
    %c0_i32_1 = arith.constant 0 : i32
    return %c0_i32, %c0_i32_0 : i32, i32
  }
  func.func @transform_7(%arg0: i32, %arg1: i32) -> (i32, i32, i32) {
    %c0_i32 = arith.constant 0 : i32
    %c0_i32_0 = arith.constant 0 : i32
    return %arg0, %arg1, %c0_i32 : i32, i32, i32
  }
  func.func @transform_8(%arg0: i32, %arg1: i32) -> (i32, i32, i32) {
    %c0_i32 = arith.constant 0 : i32
    %c0_i32_0 = arith.constant 0 : i32
    return %arg0, %arg1, %c0_i32 : i32, i32, i32
  }
  func.func @transform_9(%arg0: i32, %arg1: i32) -> (i32, i32, i32) {
    %c0_i32 = arith.constant 0 : i32
    %c0_i32_0 = arith.constant 0 : i32
    return %arg0, %arg1, %c0_i32 : i32, i32, i32
  }
  func.func @transform_10(%arg0: i32, %arg1: i32) -> (i32, i32, i32) {
    %c0_i32 = arith.constant 0 : i32
    %c0_i32_0 = arith.constant 0 : i32
    return %arg0, %arg1, %c0_i32 : i32, i32, i32
  }
  func.func @transform_11(%arg0: i32, %arg1: i32) -> (i32, i32, i32) {
    %c0_i32 = arith.constant 0 : i32
    %c0_i32_0 = arith.constant 0 : i32
    %c0_i32_1 = arith.constant 0 : i32
    return %arg0, %c0_i32, %c0_i32_0 : i32, i32, i32
  }
}

module attributes {stable_mosaic.version = 11 : i64} {
  func.func @kernel(%arg0: i32, %arg1: i32, %arg2: memref<1x16x72xbf16, #tpu.memory_space<vmem>>, %arg3: memref<1x16x72xbf16, #tpu.memory_space<vmem>>, %arg4: memref<1x16x72xbf16, #tpu.memory_space<vmem>>, %arg5: memref<1x16x72xbf16, #tpu.memory_space<vmem>>, %arg6: memref<72x16xbf16, #tpu.memory_space<vmem>>, %arg7: memref<1x16xf32, #tpu.memory_space<vmem>>, %arg8: memref<1x16xf32, #tpu.memory_space<vmem>>, %arg9: memref<1x8x128xf32, #tpu.memory_space<vmem>>) attributes {dimension_semantics = [#tpu.dimension_semantics<parallel>, #tpu.dimension_semantics<arbitrary>], iteration_bounds = array<i64: 2, 1>, scalar_prefetch = 0 : i64, scratch_operands = 0 : i64, tpu.core_type = #tpu.core_type<tc>, window_params = [{transform_indices = @transform_0, window_bounds = array<i64: 1, 16, 72>}, {transform_indices = @transform_1, window_bounds = array<i64: 1, 16, 72>}, {transform_indices = @transform_2, window_bounds = array<i64: 1, 16, 72>}, {transform_indices = @transform_3, window_bounds = array<i64: 1, 16, 72>}, {pipeline_mode = #tpu.pipeline_mode<synchronous>, transform_indices = @transform_4, window_bounds = array<i64: 72, 16>}, {pipeline_mode = #tpu.pipeline_mode<synchronous>, transform_indices = @transform_5, window_bounds = array<i64: 1, 16>}, {pipeline_mode = #tpu.pipeline_mode<synchronous>, transform_indices = @transform_6, window_bounds = array<i64: 1, 16>}, {transform_indices = @transform_7, window_bounds = array<i64: 1, 8, 128>}]} {
    %c0_i32 = arith.constant 0 : i32
    %0 = arith.cmpi eq, %arg1, %c0_i32 : i32
    %1 = arith.extui %0 : i1 to i32
    %c0_i32_0 = arith.constant 0 : i32
    %2 = arith.cmpi ne, %1, %c0_i32_0 : i32
    scf.if %2 {
      %cst_33 = arith.constant 0.000000e+00 : f32
      %54 = vector.broadcast %cst_33 : f32 to vector<8x128xf32>
      %c0_34 = arith.constant 0 : index
      %c0_35 = arith.constant 0 : index
      %c0_36 = arith.constant 0 : index
      %55 = vector.load %arg9[%c0_34, %c0_35, %c0_36] : memref<1x8x128xf32, #tpu.memory_space<vmem>>, vector<1x8x128xf32>
      %56 = vector.shape_cast %55 : vector<1x8x128xf32> to vector<8x128xf32>
      %57 = vector.shape_cast %54 : vector<8x128xf32> to vector<1x8x128xf32>
      tpu.vector_store %arg9[%c0_34, %c0_35, %c0_36], %57 {strides = array<i32>} : memref<1x8x128xf32, #tpu.memory_space<vmem>>, vector<1x8x128xf32>,
    } else {
    }
    %c0 = arith.constant 0 : index
    %c0_1 = arith.constant 0 : index
    %3 = vector.load %arg6[%c0, %c0_1] : memref<72x16xbf16, #tpu.memory_space<vmem>>, vector<72x16xbf16>
    %c0_2 = arith.constant 0 : index
    %c0_3 = arith.constant 0 : index
    %4 = vector.load %arg7[%c0_2, %c0_3] : memref<1x16xf32, #tpu.memory_space<vmem>>, vector<1x16xf32>
    %c0_4 = arith.constant 0 : index
    %c0_5 = arith.constant 0 : index
    %c0_6 = arith.constant 0 : index
    %5 = vector.load %arg2[%c0_4, %c0_5, %c0_6] : memref<1x16x72xbf16, #tpu.memory_space<vmem>>, vector<1x16x72xbf16>
    %6 = vector.shape_cast %5 : vector<1x16x72xbf16> to vector<16x72xbf16>
    %cst = arith.constant dense<0.000000e+00> : vector<16x16xf32>
    %7 = tpu.matmul %6, %3, %cst {dimension_numbers = #tpu.dot_dimension_numbers<[1], [0], [0], [1], [0, 0, 1, 1], [], []>} : vector<16x72xbf16>, vector<72x16xbf16>, vector<16x16xf32> -> vector<16x16xf32>
    %8 = vector.broadcast %4 : vector<1x16xf32> to vector<16x16xf32>
    %9 = arith.addf %7, %8 : vector<16x16xf32>
    %cst_7 = arith.constant 0.000000e+00 : f32
    %10 = vector.broadcast %cst_7 : f32 to vector<16x16xf32>
    %11 = arith.maximumf %9, %10 : vector<16x16xf32>
    %c0_8 = arith.constant 0 : index
    %c0_9 = arith.constant 0 : index
    %c0_10 = arith.constant 0 : index
    %12 = vector.load %arg3[%c0_8, %c0_9, %c0_10] : memref<1x16x72xbf16, #tpu.memory_space<vmem>>, vector<1x16x72xbf16>
    %13 = vector.shape_cast %12 : vector<1x16x72xbf16> to vector<16x72xbf16>
    %cst_11 = arith.constant dense<0.000000e+00> : vector<16x16xf32>
    %14 = tpu.matmul %13, %3, %cst_11 {dimension_numbers = #tpu.dot_dimension_numbers<[1], [0], [0], [1], [0, 0, 1, 1], [], []>} : vector<16x72xbf16>, vector<72x16xbf16>, vector<16x16xf32> -> vector<16x16xf32>
    %15 = vector.broadcast %4 : vector<1x16xf32> to vector<16x16xf32>
    %16 = arith.addf %14, %15 : vector<16x16xf32>
    %cst_12 = arith.constant 0.000000e+00 : f32
    %17 = vector.broadcast %cst_12 : f32 to vector<16x16xf32>
    %18 = arith.maximumf %16, %17 : vector<16x16xf32>
    %c0_13 = arith.constant 0 : index
    %c0_14 = arith.constant 0 : index
    %c0_15 = arith.constant 0 : index
    %19 = vector.load %arg4[%c0_13, %c0_14, %c0_15] : memref<1x16x72xbf16, #tpu.memory_space<vmem>>, vector<1x16x72xbf16>
    %20 = vector.shape_cast %19 : vector<1x16x72xbf16> to vector<16x72xbf16>
    %cst_16 = arith.constant dense<0.000000e+00> : vector<16x16xf32>
    %21 = tpu.matmul %20, %3, %cst_16 {dimension_numbers = #tpu.dot_dimension_numbers<[1], [0], [0], [1], [0, 0, 1, 1], [], []>} : vector<16x72xbf16>, vector<72x16xbf16>, vector<16x16xf32> -> vector<16x16xf32>
    %22 = vector.broadcast %4 : vector<1x16xf32> to vector<16x16xf32>
    %23 = arith.addf %21, %22 : vector<16x16xf32>
    %cst_17 = arith.constant 0.000000e+00 : f32
    %24 = vector.broadcast %cst_17 : f32 to vector<16x16xf32>
    %25 = arith.maximumf %23, %24 : vector<16x16xf32>
    %c0_18 = arith.constant 0 : index
    %c0_19 = arith.constant 0 : index
    %c0_20 = arith.constant 0 : index
    %26 = vector.load %arg5[%c0_18, %c0_19, %c0_20] : memref<1x16x72xbf16, #tpu.memory_space<vmem>>, vector<1x16x72xbf16>
    %27 = vector.shape_cast %26 : vector<1x16x72xbf16> to vector<16x72xbf16>
    %cst_21 = arith.constant dense<0.000000e+00> : vector<16x16xf32>
    %28 = tpu.matmul %27, %3, %cst_21 {dimension_numbers = #tpu.dot_dimension_numbers<[1], [0], [0], [1], [0, 0, 1, 1], [], []>} : vector<16x72xbf16>, vector<72x16xbf16>, vector<16x16xf32> -> vector<16x16xf32>
    %29 = vector.broadcast %4 : vector<1x16xf32> to vector<16x16xf32>
    %30 = arith.addf %28, %29 : vector<16x16xf32>
    %cst_22 = arith.constant 0.000000e+00 : f32
    %31 = vector.broadcast %cst_22 : f32 to vector<16x16xf32>
    %32 = arith.maximumf %30, %31 : vector<16x16xf32>
    %33 = arith.subf %11, %18 : vector<16x16xf32>
    %34 = arith.subf %25, %32 : vector<16x16xf32>
    %35 = arith.subf %33, %34 : vector<16x16xf32>
    %36 = arith.mulf %35, %35 : vector<16x16xf32>
    %c0_23 = arith.constant 0 : index
    %c0_24 = arith.constant 0 : index
    %37 = vector.load %arg8[%c0_23, %c0_24] : memref<1x16xf32, #tpu.memory_space<vmem>>, vector<1x16xf32>
    %38 = vector.broadcast %37 : vector<1x16xf32> to vector<16x16xf32>
    %39 = arith.mulf %36, %38 : vector<16x16xf32>
    %40 = vector.shape_cast %39 : vector<16x16xf32> to vector<1x16x16xf32>
    %cst_25 = arith.constant dense<0.000000e+00> : vector<1xf32>
    %41 = vector.multi_reduction <add>, %40, %cst_25 [1, 2] : vector<1x16x16xf32> to vector<1xf32>
    %42 = vector.shape_cast %41 : vector<1xf32> to vector<1x1x1xf32>
    %43 = vector.extract %42[0, 0, 0] : f32 from vector<1x1x1xf32>
    %44 = vector.broadcast %43 : f32 to vector<1x1xf32>
    %c0_26 = arith.constant 0 : index
    %c0_27 = arith.constant 0 : index
    %c0_28 = arith.constant 0 : index
    %45 = vector.load %arg9[%c0_26, %c0_27, %c0_28] : memref<1x8x128xf32, #tpu.memory_space<vmem>>, vector<1x8x128xf32>
    %46 = vector.shape_cast %45 : vector<1x8x128xf32> to vector<8x128xf32>
    %cst_29 = arith.constant 6.250000e-02 : f32
    %47 = vector.broadcast %cst_29 : f32 to vector<1x1xf32>
    %48 = arith.mulf %44, %47 : vector<1x1xf32>
    %49 = vector.broadcast %48 : vector<1x1xf32> to vector<8x128xf32>
    %50 = arith.addf %46, %49 : vector<8x128xf32>
    %c0_30 = arith.constant 0 : index
    %c0_31 = arith.constant 0 : index
    %c0_32 = arith.constant 0 : index
    %51 = vector.load %arg9[%c0_30, %c0_31, %c0_32] : memref<1x8x128xf32, #tpu.memory_space<vmem>>, vector<1x8x128xf32>
    %52 = vector.shape_cast %51 : vector<1x8x128xf32> to vector<8x128xf32>
    %53 = vector.shape_cast %50 : vector<8x128xf32> to vector<1x8x128xf32>
    tpu.vector_store %arg9[%c0_30, %c0_31, %c0_32], %53 {strides = array<i32>} : memref<1x8x128xf32, #tpu.memory_space<vmem>>, vector<1x8x128xf32>,
    return
  }
  func.func @transform_0(%arg0: i32, %arg1: i32) -> (i32, i32, i32) {
    %c0_i32 = arith.constant 0 : i32
    %c0_i32_0 = arith.constant 0 : i32
    return %arg0, %arg1, %c0_i32 : i32, i32, i32
  }
  func.func @transform_1(%arg0: i32, %arg1: i32) -> (i32, i32, i32) {
    %c0_i32 = arith.constant 0 : i32
    %c0_i32_0 = arith.constant 0 : i32
    return %arg0, %arg1, %c0_i32 : i32, i32, i32
  }
  func.func @transform_2(%arg0: i32, %arg1: i32) -> (i32, i32, i32) {
    %c0_i32 = arith.constant 0 : i32
    %c0_i32_0 = arith.constant 0 : i32
    return %arg0, %arg1, %c0_i32 : i32, i32, i32
  }
  func.func @transform_3(%arg0: i32, %arg1: i32) -> (i32, i32, i32) {
    %c0_i32 = arith.constant 0 : i32
    %c0_i32_0 = arith.constant 0 : i32
    return %arg0, %arg1, %c0_i32 : i32, i32, i32
  }
  func.func @transform_4(%arg0: i32, %arg1: i32) -> (i32, i32) {
    %c0_i32 = arith.constant 0 : i32
    %c0_i32_0 = arith.constant 0 : i32
    %c0_i32_1 = arith.constant 0 : i32
    return %c0_i32, %c0_i32_0 : i32, i32
  }
  func.func @transform_5(%arg0: i32, %arg1: i32) -> (i32, i32) {
    %c0_i32 = arith.constant 0 : i32
    %c0_i32_0 = arith.constant 0 : i32
    %c0_i32_1 = arith.constant 0 : i32
    return %c0_i32, %c0_i32_0 : i32, i32
  }
  func.func @transform_6(%arg0: i32, %arg1: i32) -> (i32, i32) {
    %c0_i32 = arith.constant 0 : i32
    %c0_i32_0 = arith.constant 0 : i32
    %c0_i32_1 = arith.constant 0 : i32
    return %c0_i32, %c0_i32_0 : i32, i32
  }
  func.func @transform_7(%arg0: i32, %arg1: i32) -> (i32, i32, i32) {
    %c0_i32 = arith.constant 0 : i32
    %c0_i32_0 = arith.constant 0 : i32
    %c0_i32_1 = arith.constant 0 : i32
    return %arg0, %c0_i32, %c0_i32_0 : i32, i32, i32
  }
}

</mosaic_0001>

<bundles_post_ra>
// kernel: fdb_loss.3
= control target key start
LH: loop header
LB: loop body
LE: loop exit
PB: predicated region body
PF: predicated region fallthrough
CT: control target
= control target key end

     0   :  { %s112_s0 = inlined_call_operand.vmem [shape: f32[16,128], index: 0, kind: input, shape index: {}]   ;;  %s113_s1 = inlined_call_operand.vmem [shape: f32[16,128], index: 1, kind: input, shape index: {}]   ;;  %s114_s2 = inlined_call_operand.vmem [shape: f32[16,128], index: 2, kind: input, shape index: {}]   ;;  %s115_s3 = inlined_call_operand.vmem [shape: f32[16,128], index: 3, kind: input, shape index: {}]   ;;  %s116_s4 = inlined_call_operand.vmem [shape: f32[8,128], index: 4, kind: output, shape index: {}]  }
   0x1   :  { %v22_v0 = vld [vmem:[%s112_s0] sm:$0xff]  ;;  %v23_v1 = vld [vmem:[%s112_s0 + $0x8] sm:$0xff] }
   0x2   :  { %v24_v2 = vld [vmem:[%s113_s1] sm:$0xff]  ;;  %v25_v3 = vld [vmem:[%s113_s1 + $0x8] sm:$0xff] }
   0x3   :  { %v26_v4 = vsub.f32 %v22_v0, %v24_v2  ;;  %v28_v5 = vld [vmem:[%s114_s2] sm:$0xff]  ;;  %v29_v6 = vld [vmem:[%s114_s2 + $0x8] sm:$0xff]  ;;  %v27_v7 = vsub.f32 %v23_v1, %v25_v3 }
   0x4   :  { %v30_v8 = vld [vmem:[%s115_s3] sm:$0xff]  ;;  %v31_v9 = vld [vmem:[%s115_s3 + $0x8] sm:$0xff] }
   0x5   :  { %v32_v10 = vsub.f32 %v28_v5, %v30_v8  ;;  %v33_v11 = vsub.f32 %v29_v6, %v31_v9 }
   0x7   :  { %v34_v12 = vsub.f32 %v26_v4, %v32_v10  ;;  %v35_v13 = vsub.f32 %v27_v7, %v33_v11 }
   0x9   :  { %v37_v14 = vmul.f32 %v34_v12, %v34_v12  ;;  %v38_v15 = vmul.f32 %v35_v13, %v35_v13 }
   0xb   :  { %v39_v16 = vadd.f32 %v38_v15, %v37_v14 }
   0xd   :  { %40 = vadd.xlane.f32.xlu0 %v39_v16 }
  0x9a   :  { %v41_v17 = vpop.xlane.xlu0 %40 }
  0x9b   :  { %v42_v18 = vrot.slane %v41_v17, 4 }
  0x9d   :  { %v43_v19 = vadd.f32 %v42_v18, %v41_v17 }
  0x9f   :  { %v44_v20 = vrot.slane %v43_v19, 2 }
  0xa1   :  { %v45_v21 = vadd.f32 %v44_v20, %v43_v19 }
  0xa3   :  { %v46_v22 = vrot.slane %v45_v21, 1 }
  0xa5   :  { %v47_v23 = vadd.f32 %v46_v22, %v45_v21 }
  0xa7   :  { %57 = vpush %v47_v23 }
  0xd8   :  { %s58_s1 = spop %57 }
  0xd9   :  { %v49_v24 = vstv %s58_s1 }
  0xda   :  { %v50_v25 = vmul.f32 0.0006510417, %v49_v24 }
  0xdc   :  { %52 = vst [vmem:[%s116_s4] sm:$0xff] %v50_v25 }

// kernel: fdb_loss.5
= control target key start
LH: loop header
LB: loop body
LE: loop exit
PB: predicated region body
PF: predicated region fallthrough
CT: control target
= control target key end

     0   :  { %s1053_s24 = smov 0   ;;  %s1055_s25 = smov 0   ;;  %s1141_s0 = inlined_call_operand.vmem [shape: bf16[2,16,72], index: 0, kind: input, shape index: {}]   ;;  %s1142_s1 = inlined_call_operand.vmem [shape: bf16[2,16,72], index: 1, kind: input, shape index: {}]   ;;  %s1143_s2 = inlined_call_operand.vmem [shape: bf16[2,16,72], index: 2, kind: input, shape index: {}]   ;;  %s1144_s3 = inlined_call_operand.vmem [shape: bf16[2,16,72], index: 3, kind: input, shape index: {}]   ;;  %s1145_s4 = inlined_call_operand.vmem [shape: bf16[72,16], index: 4, kind: input, shape index: {}]   ;;  %s1146_s5 = inlined_call_operand.vmem [shape: f32[1,16], index: 5, kind: input, shape index: {}]   ;;  %s1147_s6 = inlined_call_operand.vmem [shape: f32[1,16], index: 6, kind: input, shape index: {}]   ;;  %s1148_s7 = inlined_call_operand.vmem [shape: f32[2,8,128], index: 7, kind: output, shape index: {}]  }
   0x1   :  { %s1057_s26 = smov 0  }
   0x2 LB: > { %s29_s27 = sadd.s32 1, %s1005_s25  ;;  %p839_p0 = scmp.ge.s32.totalorder %s1009_s26, 1  ;;  %s1009_s26 = sphi %s1057_s26, %s17_s26   ;;  %s1005_s25 = sphi %s1055_s25, %s1150_s25   ;;  %s1001_s24 = sphi %s1053_s24, %s1149_s24  }
   0x3   : > { %p31_p1 = scmp.ge.s32.totalorder %s29_s27, 2  ;;  %p307_p2 = scmp.lt.s32.totalorder %s1009_s26, 3 }
   0x5   : > { %s1152_s27 = smov (%p31_p1, %s29_s27), 0  ;;  %p308_p3 = pnand %p839_p0, %p307_p2 }
   0x6   : > { %v978_v0 = vld [vmem:[%s1145_s4] sm:$0xff] (!%p308_p3)   ;;  %v1011_v1 = vmov (!%p308_p3), 0.0   ;;  %v979_v2 = vld [vmem:[%s1145_s4 + $0x8] sm:$0xff] (!%p308_p3)   ;;  %p370_p4 = scmp.lt.s32.totalorder (!%p308_p3), %s1001_s24, 1  ;;  %vm1012_vm0 = vmmov (!%p308_p3), 0   ;;  %v980_v3 = vld [vmem:[%s1145_s4 + $0x10] sm:$0xff] (!%p308_p3)  }
   0x7   : > { %311 = sbr.rel (%p308_p3) target bundleno = 484 (0x1e4), region = 48  ;;  %894 = vmatprep.subr.bf16.mxu0 (!%p308_p3), %v1011_v1  ;;  %908 = vmatprep.subr.bf16.mxu1 (!%p308_p3), %v1011_v1  ;;  %v981_v4 = vld [vmem:[%s1145_s4 + $0x18] sm:$0xff] (!%p308_p3)   ;;  %v982_v5 = vld [vmem:[%s1145_s4 + $0x20] ss:$0 sps:$4 sm:$0xff] (!%p308_p3)   ;;  %vm473_vm1 = vcmask (!%p308_p3), 1043456   ;;  %vm469_vm2 = vcmask (!%p308_p3), 588800  }
   0x8   : > { %895 = vmatpush3.bf16.msra.mxu0 (!%p308_p3), %v978_v0  ;;  %909 = vmatpush3.bf16.msra.mxu1 (!%p308_p3), %v978_v0  ;;  %v475_v6 = vsel (!%p308_p3), %vm473_vm1, %v982_v5, 0  ;;  %v849_v11 = vld [vmem:[%s1146_s5] ss:$0 sm:$0xff] (!%p308_p3)  ;;  %vm696_vm3 = vcmask (!%p308_p3), 130048  }
   0x9   : > { %896 = vmatprep.subr.bf16.mxu0 (!%p308_p3), %v1011_v1  ;;  %910 = vmatprep.subr.bf16.mxu1 (!%p308_p3), %v1011_v1  ;;  %v863_v49 = vld [vmem:[%s1147_s6] ss:$0 sm:$0xff] (!%p308_p3) }
   0xa   : > { %904 = vmatprep.mubr.msk.bf16.mxu0 (!%p308_p3), %vm1012_vm0, %v1011_v1  ;;  %918 = vmatprep.mubr.msk.bf16.mxu1 (!%p308_p3), %vm1012_vm0, %v1011_v1 }
   0xc   : > { %897 = vmatpush3.bf16.msra.mxu0 (!%p308_p3), %v979_v2  ;;  %911 = vmatpush3.bf16.msra.mxu1 (!%p308_p3), %v979_v2 }
   0xd   : > { %898 = vmatprep.subr.bf16.mxu0 (!%p308_p3), %v1011_v1  ;;  %912 = vmatprep.subr.bf16.mxu1 (!%p308_p3), %v1011_v1 }
   0xe   : > { %s1154_s24 = smov (!%p370_p4, %s1001_s24), 1 }
   0xf   : > { %s1082_s11 = sshll.u32 %s1154_s24, 3 }
  0x10   : > { %s377_s14 = scalar_lea.vmem %s1141_s0, %s1082_s11  ;;  %s387_s17 = scalar_lea.vmem %s1142_s1, %s1082_s11  ;;  %899 = vmatpush3.bf16.msra.mxu0 %v980_v3  ;;  %913 = vmatpush3.bf16.msra.mxu1 %v980_v3 }
  0x11   : > { %s397_s22 = scalar_lea.vmem %s1143_s2, %s1082_s11  ;;  %900 = vmatprep.subr.bf16.mxu0 %v1011_v1  ;;  %914 = vmatprep.subr.bf16.mxu1 %v1011_v1  ;;  %s407_s30 = scalar_lea.vmem %s1144_s3, %s1082_s11  ;;  %v983_v7 = vld [vmem:[%s377_s14] sm:$0xff]  }
  0x12   : > { %v984_v8 = vld [vmem:[%s387_s17] sm:$0xff]   ;;  %s412_s20 = scalar_lea.vmem %s1148_s7, %s1082_s11 }
  0x13   : > { %v985_v9 = vld [vmem:[%s397_s22] sm:$0xff]  }
  0x14   : > { %901 = vmatpush3.bf16.msra.mxu0 %v981_v4  ;;  %915 = vmatpush3.bf16.msra.mxu1 %v981_v4  ;;  %v986_v10 = vld [vmem:[%s407_s30] sm:$0xff]  }
  0x15   : > { %902 = vmatprep.subr.bf16.mxu0 %v1011_v1  ;;  %916 = vmatprep.subr.bf16.mxu1 %v1011_v1 }
  0x18   : > { %903 = vmatpush3.bf16.msra.mxu0 %v475_v6  ;;  %917 = vmatpush3.bf16.msra.mxu1 %v475_v6 }
  0x19   : > { %922 = vmatprep.subr.bf16.mxu0 %v1011_v1  ;;  %936 = vmatprep.subr.bf16.mxu1 %v1011_v1 }
  0x1b   : > { %905 = vmatmul.mubr.msk.bf16.vlgmr.msra.gmra.mrb[0].mxu0 %vm469_vm2, %v983_v7  ;;  %919 = vmatmul.mubr.msk.bf16.vlgmr.msra.gmra.mrb[0].mxu1 %vm469_vm2, %v984_v8 }
  0x1c   : > { %923 = vmatpush3.bf16.msra.mxu0 %v978_v0  ;;  %937 = vmatpush3.bf16.msra.mxu1 %v978_v0 }
  0x1d   : > { %924 = vmatprep.subr.bf16.mxu0 %v1011_v1  ;;  %938 = vmatprep.subr.bf16.mxu1 %v1011_v1 }
  0x1e   : > { %932 = vmatprep.mubr.msk.bf16.mxu0 %vm1012_vm0, %v1011_v1  ;;  %946 = vmatprep.mubr.msk.bf16.mxu1 %vm1012_vm0, %v1011_v1 }
  0x20   : > { %925 = vmatpush3.bf16.msra.mxu0 %v979_v2  ;;  %939 = vmatpush3.bf16.msra.mxu1 %v979_v2 }
  0x21   : > { %926 = vmatprep.subr.bf16.mxu0 %v1011_v1  ;;  %940 = vmatprep.subr.bf16.mxu1 %v1011_v1 }
  0x24   : > { %927 = vmatpush3.bf16.msra.mxu0 %v980_v3  ;;  %941 = vmatpush3.bf16.msra.mxu1 %v980_v3 }
  0x25   : > { %928 = vmatprep.subr.bf16.mxu0 %v1011_v1  ;;  %942 = vmatprep.subr.bf16.mxu1 %v1011_v1 }
  0x28   : > { %929 = vmatpush3.bf16.msra.mxu0 %v981_v4  ;;  %943 = vmatpush3.bf16.msra.mxu1 %v981_v4 }
  0x29   : > { %930 = vmatprep.subr.bf16.mxu0 %v1011_v1  ;;  %944 = vmatprep.subr.bf16.mxu1 %v1011_v1 }
  0x2c   : > { %931 = vmatpush3.bf16.msra.mxu0 %v475_v6  ;;  %945 = vmatpush3.bf16.msra.mxu1 %v475_v6 }
  0x2f   : > { %933 = vmatmul.mubr.msk.bf16.vlgmr.msra.gmra.mrb[4].mxu0 %vm469_vm2, %v985_v9  ;;  %947 = vmatmul.mubr.msk.bf16.vlgmr.msra.gmra.mrb[4].mxu1 %vm469_vm2, %v986_v10 }
  0xee   : > { %v511_v12 = vpop.f32.mrb[0].mxu0  ;;  %v564_v13 = vpop.f32.mrb[0].mxu1 }
  0xef   : > { %v512_v14 = vadd.f32 %v849_v11, %v511_v12  ;;  %v565_v15 = vadd.f32 %v849_v11, %v564_v13  ;;  %v906_v16 = vpop.f32.mrb[1].mxu0  ;;  %v920_v17 = vpop.f32.mrb[1].mxu1 }
  0xf0   : > { %v514_v18 = vpop.f32.mrb[2].mxu0  ;;  %v567_v19 = vpop.f32.mrb[2].mxu1 }
  0xf1   : > { %v518_v20 = vmax.f32 %v512_v14, 0.0  ;;  %v571_v21 = vmax.f32 %v565_v15, 0.0  ;;  %v515_v22 = vadd.f32 %v849_v11, %v514_v18  ;;  %v568_v23 = vadd.f32 %v849_v11, %v567_v19  ;;  %v907_v24 = vpop.f32.mrb[3].mxu0  ;;  %v921_v25 = vpop.f32.mrb[3].mxu1 }
  0xf3   : > { %v679_v26 = vsub.f32 %v518_v20, %v571_v21  ;;  %v519_v27 = vmax.f32 %v515_v22, 0.0  ;;  %v572_v28 = vmax.f32 %v568_v23, 0.0 }
  0xf5   : > { %v680_v29 = vsub.f32 %v519_v27, %v572_v28 }
 0x102   : > { %v617_v30 = vpop.f32.mrb[4].mxu0  ;;  %v670_v31 = vpop.f32.mrb[4].mxu1 }
 0x103   : > { %v618_v32 = vadd.f32 %v849_v11, %v617_v30  ;;  %v671_v33 = vadd.f32 %v849_v11, %v670_v31  ;;  %v934_v34 = vpop.f32.mrb[5].mxu0  ;;  %v948_v35 = vpop.f32.mrb[5].mxu1 }
 0x104   : > { %v620_v36 = vpop.f32.mrb[6].mxu0  ;;  %v673_v37 = vpop.f32.mrb[6].mxu1 }
 0x105   : > { %v624_v38 = vmax.f32 %v618_v32, 0.0  ;;  %v677_v39 = vmax.f32 %v671_v33, 0.0  ;;  %v621_v40 = vadd.f32 %v849_v11, %v620_v36  ;;  %v674_v41 = vadd.f32 %v849_v11, %v673_v37  ;;  %v935_v42 = vpop.f32.mrb[7].mxu0  ;;  %v949_v43 = vpop.f32.mrb[7].mxu1 }
 0x107   : > { %v681_v44 = vsub.f32 %v624_v38, %v677_v39  ;;  %v625_v45 = vmax.f32 %v621_v40, 0.0  ;;  %v678_v46 = vmax.f32 %v674_v41, 0.0 }
 0x109   : > { %v683_v47 = vsub.f32 %v679_v26, %v681_v44  ;;  %v682_v48 = vsub.f32 %v625_v45, %v678_v46 }
 0x10b   : > { %v684_v50 = vsub.f32 %v680_v29, %v682_v48  ;;  %v685_v51 = vmul.f32 %v683_v47, %v683_v47 }
 0x10d   : > { %v686_v52 = vmul.f32 %v684_v50, %v684_v50  ;;  %v694_v53 = vmul.f32 %v863_v49, %v685_v51 }
 0x10f   : > { %v695_v54 = vmul.f32 %v863_v49, %v686_v52  ;;  %v697_v55 = vsel %vm696_vm3, %v694_v53, 0.0 }
 0x111   : > { %v698_v56 = vsel %vm696_vm3, %v695_v54, 0.0 }
 0x112   : > { %v699_v57 = vadd.f32 %v698_v56, %v697_v55 }
 0x114   : > { %700 = vadd.xlane.f32.xlu0 %v699_v57 }
 0x1a1   : > { %v701_v58 = vpop.xlane.xlu0 %700 }
 0x1a2   : > { %v702_v59 = vrot.slane %v701_v58, 4 }
 0x1a4   : > { %v703_v60 = vadd.f32 %v702_v59, %v701_v58 }
 0x1a6   : > { %v704_v61 = vrot.slane %v703_v60, 2 }
 0x1a8   : > { %v705_v62 = vadd.f32 %v704_v61, %v703_v60 }
 0x1aa   : > { %v706_v63 = vrot.slane %v705_v62, 1 }
 0x1ac   : > { %v707_v0 = vadd.f32 %v706_v63, %v705_v62 }
 0x1ae   : > { %950 = vpush %v707_v0 }
 0x1df   : > { %s951_s17 = spop %950 }
 0x1e0   : > { %v709_v1 = vstv %s951_s17 }
 0x1e1   : > { %v711_v2 = vmul.f32 0.0625, %v709_v1 }
 0x1e3   : > { %713 = vst [vmem:[%s412_s20] sm:$0xff] %v711_v2 }
 0x1e4 PF: > { %s17_s26 = sadd.s32 1, %s1009_s26   ;;  %s1149_s24 = smov %s1005_s25 }
 0x1e5   : > { %p14_p5 = scmp.ge.s32.totalorder %s17_s26, 4   ;;  %s1150_s25 = smov %s1152_s27 }
 0x1e7   :  { %16 = sbr.rel (!%p14_p5) target bundleno = 2 (0x2), region = 91 }

// kernel: fdb_loss.4
= control target key start
LH: loop header
LB: loop body
LE: loop exit
PB: predicated region body
PF: predicated region fallthrough
CT: control target
= control target key end

     0   :  { %s1997_s17 = smov 0   ;;  %s1999_s18 = smov 0   ;;  %s2321_s0 = inlined_call_operand.vmem [shape: bf16[2,64,27], index: 0, kind: input, shape index: {}]   ;;  %s2322_s1 = inlined_call_operand.vmem [shape: bf16[2,64,27], index: 1, kind: input, shape index: {}]   ;;  %s2323_s2 = inlined_call_operand.vmem [shape: bf16[2,64,27], index: 2, kind: input, shape index: {}]   ;;  %s2324_s3 = inlined_call_operand.vmem [shape: bf16[2,64,27], index: 3, kind: input, shape index: {}]   ;;  %s2325_s4 = inlined_call_operand.vmem [shape: bf16[27,8], index: 4, kind: input, shape index: {}]   ;;  %s2326_s5 = inlined_call_operand.vmem [shape: f32[1,8], index: 5, kind: input, shape index: {}]   ;;  %s2327_s6 = inlined_call_operand.vmem [shape: f32[1,8], index: 6, kind: input, shape index: {}]   ;;  %s2328_s7 = inlined_call_operand.vmem [shape: bf16[2,64,8], index: 7, kind: output, shape index: {0}]   ;;  %s2329_s8 = inlined_call_operand.vmem [shape: bf16[2,64,8], index: 8, kind: output, shape index: {1}]   ;;  %s2330_s9 = inlined_call_operand.vmem [shape: bf16[2,64,8], index: 9, kind: output, shape index: {2}]   ;;  %s2331_s10 = inlined_call_operand.vmem [shape: bf16[2,64,8], index: 10, kind: output, shape index: {3}]   ;;  %s2332_s11 = inlined_call_operand.vmem [shape: f32[2,8,128], index: 11, kind: output, shape index: {4}]  }
   0x1   :  { %s2001_s19 = smov 0  }
   0x2 LB: > { %s34_s20 = sadd.s32 1, %s1930_s18  ;;  %p1666_p0 = scmp.ge.s32.totalorder %s1934_s19, 1  ;;  %s1934_s19 = sphi %s2001_s19, %s22_s19   ;;  %s1930_s18 = sphi %s1999_s18, %s2334_s18   ;;  %s1926_s17 = sphi %s1997_s17, %s2333_s17  }
   0x3   : > { %p36_p1 = scmp.ge.s32.totalorder %s34_s20, 2  ;;  %p424_p2 = scmp.lt.s32.totalorder %s1934_s19, 3 }
   0x5   : > { %s2336_s20 = smov (%p36_p1, %s34_s20), 0  ;;  %p425_p3 = pnand %p1666_p0, %p424_p2 }
   0x6   : > { %v1894_v0 = vld [vmem:[%s2325_s4] sm:$0xff] (!%p425_p3)   ;;  %vm683_vm0 = vcmask (!%p425_p3), 1044480   ;;  %v1895_v1 = vld [vmem:[%s2325_s4 + $0x8] sm:$0x3f] (!%p425_p3)   ;;  %vm684_vm1 = vcmask (!%p425_p3), 1045504   ;;  %p531_p4 = scmp.lt.s32.totalorder (!%p425_p3), %s1926_s17, 1 }
   0x7   : > { %428 = sbr.rel (%p425_p3) target bundleno = 490 (0x1ea), region = 48  ;;  %1818 = vmatprep.subr.bf16.mxu0 (!%p425_p3), %v1894_v0  ;;  %1830 = vmatprep.subr.bf16.mxu1 (!%p425_p3), %v1894_v0  ;;  %v1936_v2 = vmov (!%p425_p3), 65535   ;;  %vm670_vm2 = vcmask (!%p425_p3), 220160   ;;  %v2061_v22 = vld [vmem:[%s2326_s5] ss:$0 sm:$0xff] (!%p425_p3)  ;;  %vm795_vm3 = vcmask (!%p425_p3), 60416  }
   0x8   : > { %1819 = vmatpush3.bf16.msra.mxu0 (!%p425_p3), %v1894_v0  ;;  %1831 = vmatpush3.bf16.msra.mxu1 (!%p425_p3), %v1894_v0  ;;  %v685_v3 = vsel (!%p425_p3), %vm683_vm0, 4294967295, %v1936_v2  ;;  %vm1310_vm4 = vcmask (!%p425_p3), 64512  }
   0x9   : > { %v686_v4 = vsel (!%p425_p3), %vm684_vm1, %v685_v3, 0 }
   0xa   : > { %v688_v5 = vand.u32 (!%p425_p3), %v1895_v1, %v686_v4 }
   0xc   : > { %1820 = vmatprep.subr.bf16.mxu0 (!%p425_p3), %v688_v5  ;;  %1832 = vmatprep.subr.bf16.mxu1 (!%p425_p3), %v688_v5 }
   0xd   : > { %1821 = vmatpush3.bf16.msra.mxu0 (!%p425_p3), %v688_v5  ;;  %1833 = vmatpush3.bf16.msra.mxu1 (!%p425_p3), %v688_v5 }
   0xe   : > { %s2338_s17 = smov (!%p531_p4, %s1926_s17), 1  ;;  %1842 = vmatprep.subr.bf16.mxu0 %v1894_v0  ;;  %1854 = vmatprep.subr.bf16.mxu1 %v1894_v0 }
   0xf   : > { %s2024_s25 = sshll.u32 %s2338_s17, 5  ;;  %s1683_s24 = sshll.u32 %s2338_s17, 3 }
  0x10   : > { %s538_s28 = scalar_lea.vmem %s2321_s0, %s2024_s25  ;;  %s548_s12 = scalar_lea.vmem %s2322_s1, %s2024_s25 }
  0x11   : > { %v1896_v6 = vld [vmem:[%s538_s28] sm:$0xff]   ;;  %v1898_v8 = vld [vmem:[%s538_s28 + $0x8] sm:$0xff]   ;;  %v1900_v10 = vld [vmem:[%s538_s28 + $0x10] sm:$0xff]   ;;  %s558_s15 = scalar_lea.vmem %s2323_s2, %s2024_s25  ;;  %s568_s22 = scalar_lea.vmem %s2324_s3, %s2024_s25 }
  0x12   : > { %v1897_v7 = vld [vmem:[%s548_s12] sm:$0xff]   ;;  %1822 = vmatprep.mubr.msk.bf16.mxu0 %vm670_vm2, %v1896_v6  ;;  %v1899_v9 = vld [vmem:[%s548_s12 + $0x8] sm:$0xff]   ;;  %v1901_v11 = vld [vmem:[%s548_s12 + $0x10] sm:$0xff]   ;;  %s613_s29 = scalar_lea.vmem %s2332_s11, %s1683_s24 }
  0x13   : > { %1834 = vmatprep.mubr.msk.bf16.mxu1 %vm670_vm2, %v1897_v7  ;;  %1823 = vmatmul.mubr.msk.bf16.vlgmr.msra.gmra.mrb[0].mxu0 %vm670_vm2, %v1898_v8  ;;  %v1902_v12 = vld [vmem:[%s538_s28 + $0x18] sm:$0xff]   ;;  %v1904_v14 = vld [vmem:[%s558_s15] sm:$0xff]   ;;  %v1906_v16 = vld [vmem:[%s558_s15 + $0x8] sm:$0xff]   ;;  %s2074_s28 = scalar_lea.vmem %s2328_s7, %s2024_s25 }
  0x14   : > { %1835 = vmatmul.mubr.msk.bf16.vlgmr.msra.gmra.mrb[0].mxu1 %vm670_vm2, %v1899_v9  ;;  %1843 = vmatpush3.bf16.msra.mxu0 %v1894_v0  ;;  %v1903_v13 = vld [vmem:[%s548_s12 + $0x18] sm:$0xff]   ;;  %v1905_v15 = vld [vmem:[%s568_s22] sm:$0xff]   ;;  %v1907_v17 = vld [vmem:[%s568_s22 + $0x8] sm:$0xff]   ;;  %s2088_s12 = scalar_lea.vmem %s2329_s8, %s2024_s25 }
  0x15   : > { %1855 = vmatpush3.bf16.msra.mxu1 %v1894_v0  ;;  %1826 = vmatprep.mubr.msk.bf16.mxu0 %vm670_vm2, %v1900_v10  ;;  %v1908_v18 = vld [vmem:[%s558_s15 + $0x10] sm:$0xff]   ;;  %v1910_v20 = vld [vmem:[%s558_s15 + $0x18] sm:$0xff]   ;;  %s2212_s15 = scalar_lea.vmem %s2330_s9, %s2024_s25 }
  0x16   : > { %1838 = vmatprep.mubr.msk.bf16.mxu1 %vm670_vm2, %v1901_v11  ;;  %1844 = vmatprep.subr.bf16.mxu0 %v688_v5  ;;  %v1909_v19 = vld [vmem:[%s568_s22 + $0x10] sm:$0xff]   ;;  %v1911_v21 = vld [vmem:[%s568_s22 + $0x18] sm:$0xff]   ;;  %s2220_s22 = scalar_lea.vmem %s2331_s10, %s2024_s25 }
  0x17   : > { %1856 = vmatprep.subr.bf16.mxu1 %v688_v5 }
  0x18   : > { %1845 = vmatpush3.bf16.msra.mxu0 %v688_v5 }
  0x19   : > { %1857 = vmatpush3.bf16.msra.mxu1 %v688_v5 }
  0x1b   : > { %1827 = vmatmul.mubr.msk.bf16.gmra.mrb[4].mxu0 %vm670_vm2, %v1902_v12 }
  0x1c   : > { %1839 = vmatmul.mubr.msk.bf16.gmra.mrb[4].mxu1 %vm670_vm2, %v1903_v13  ;;  %1846 = vmatprep.mubr.msk.bf16.mxu0 %vm670_vm2, %v1904_v14 }
  0x1d   : > { %1858 = vmatprep.mubr.msk.bf16.mxu1 %vm670_vm2, %v1905_v15 }
  0x23   : > { %1847 = vmatmul.mubr.msk.bf16.vlgmr.msra.gmra.mrb[8].mxu0 %vm670_vm2, %v1906_v16 }
  0x24   : > { %1859 = vmatmul.mubr.msk.bf16.vlgmr.msra.gmra.mrb[8].mxu1 %vm670_vm2, %v1907_v17  ;;  %1850 = vmatprep.mubr.msk.bf16.mxu0 %vm670_vm2, %v1908_v18 }
  0x25   : > { %1862 = vmatprep.mubr.msk.bf16.mxu1 %vm670_vm2, %v1909_v19 }
  0x2b   : > { %1851 = vmatmul.mubr.msk.bf16.gmra.mrb[12].mxu0 %vm670_vm2, %v1910_v20 }
  0x2c   : > { %1863 = vmatmul.mubr.msk.bf16.gmra.mrb[12].mxu1 %vm670_vm2, %v1911_v21 }
  0xe6   : > { %v1824_v23 = vpop.f32.mrb[0].mxu0 }
  0xe7   : > { %v733_v24 = vadd.f32 %v1824_v23, %v2061_v22  ;;  %v1836_v25 = vpop.f32.mrb[0].mxu1  ;;  %v724_v26 = vpop.f32.mrb[1].mxu0 }
  0xe8   : > { %v887_v27 = vadd.f32 %v1836_v25, %v2061_v22  ;;  %v725_v28 = vadd.f32 %v2061_v22, %v724_v26  ;;  %v878_v29 = vpop.f32.mrb[1].mxu1  ;;  %v1825_v30 = vpop.f32.mrb[2].mxu0 }
  0xe9   : > { %v2066_v31 = vmax.f32 %v733_v24, 0.0  ;;  %v879_v32 = vadd.f32 %v2061_v22, %v878_v29  ;;  %v736_v33 = vadd.f32 %v1825_v30, %v2061_v22  ;;  %v1837_v34 = vpop.f32.mrb[2].mxu1  ;;  %v727_v35 = vpop.f32.mrb[3].mxu0 }
  0xea   : > { %v2076_v36 = vmax.f32 %v887_v27, 0.0  ;;  %v2078_v37 = vmax.f32 %v725_v28, 0.0  ;;  %v890_v38 = vadd.f32 %v1837_v34, %v2061_v22  ;;  %v728_v39 = vadd.f32 %v2061_v22, %v727_v35  ;;  %v881_v40 = vpop.f32.mrb[3].mxu1 }
  0xeb   : > { %v1764_v41 = vpack.c.bf16 %v2066_v31, %v2066_v31  ;;  %v2090_v42 = vmax.f32 %v879_v32, 0.0  ;;  %v2092_v43 = vmax.f32 %v736_v33, 0.0  ;;  %v882_v44 = vadd.f32 %v2061_v22, %v881_v40 }
  0xec   : > { %v1772_v45 = vpack.c.bf16 %v2076_v36, %v2076_v36  ;;  %v1265_v46 = vsub.f32 %v2066_v31, %v2076_v36  ;;  %v1762_v47 = vpack.c.bf16 %v2078_v37, %v2078_v37  ;;  %v2101_v48 = vmax.f32 %v890_v38, 0.0 }
  0xed   : > { %798 = vst.msk [vmem:[%s2074_s28 + $0x8] sm:$0xf] %vm795_vm3, %v1764_v41  ;;  %v1770_v49 = vpack.c.bf16 %v2090_v42, %v2090_v42  ;;  %v1263_v50 = vsub.f32 %v2078_v37, %v2090_v42  ;;  %v1765_v51 = vpack.c.bf16 %v2092_v43, %v2092_v43  ;;  %v2111_v52 = vmax.f32 %v728_v39, 0.0 }
  0xee   : > { %951 = vst.msk [vmem:[%s2088_s12 + $0x8] sm:$0xf] %vm795_vm3, %v1772_v45  ;;  %796 = vst.msk [vmem:[%s2074_s28] sm:$0xf] %vm795_vm3, %v1762_v47  ;;  %v1773_v53 = vpack.c.bf16 %v2101_v48, %v2101_v48  ;;  %v1266_v54 = vsub.f32 %v2092_v43, %v2101_v48  ;;  %v2121_v55 = vmax.f32 %v882_v44, 0.0  ;;  %v1828_v56 = vpop.f32.mrb[4].mxu0 }
  0xef   : > { %949 = vst.msk [vmem:[%s2088_s12] sm:$0xf] %vm795_vm3, %v1770_v49  ;;  %799 = vst.msk [vmem:[%s2074_s28 + $0xc] sm:$0xf] %vm795_vm3, %v1765_v51  ;;  %v1763_v57 = vpack.c.bf16 %v2111_v52, %v2111_v52  ;;  %v749_v58 = vadd.f32 %v1828_v56, %v2061_v22  ;;  %v1840_v59 = vpop.f32.mrb[4].mxu1  ;;  %v740_v60 = vpop.f32.mrb[5].mxu0 }
  0xf0   : > { %952 = vst.msk [vmem:[%s2088_s12 + $0xc] sm:$0xf] %vm795_vm3, %v1773_v53  ;;  %v1771_v61 = vpack.c.bf16 %v2121_v55, %v2121_v55  ;;  %v1264_v62 = vsub.f32 %v2111_v52, %v2121_v55  ;;  %v903_v63 = vadd.f32 %v1840_v59, %v2061_v22  ;;  %v741_v0 = vadd.f32 %v2061_v22, %v740_v60  ;;  %v894_v1 = vpop.f32.mrb[5].mxu1  ;;  %v1829_v2 = vpop.f32.mrb[6].mxu0 }
  0xf1   : > { %797 = vst.msk [vmem:[%s2074_s28 + $0x4] sm:$0xf] %vm795_vm3, %v1763_v57  ;;  %v2140_v3 = vmax.f32 %v749_v58, 0.0  ;;  %v895_v4 = vadd.f32 %v2061_v22, %v894_v1  ;;  %v752_v5 = vadd.f32 %v1829_v2, %v2061_v22  ;;  %v1841_v6 = vpop.f32.mrb[6].mxu1  ;;  %v743_v7 = vpop.f32.mrb[7].mxu0 }
  0xf2   : > { %950 = vst.msk [vmem:[%s2088_s12 + $0x4] sm:$0xf] %vm795_vm3, %v1771_v61  ;;  %v2146_v8 = vmax.f32 %v903_v63, 0.0  ;;  %v2148_v9 = vmax.f32 %v741_v0, 0.0  ;;  %v906_v10 = vadd.f32 %v1841_v6, %v2061_v22  ;;  %v744_v11 = vadd.f32 %v2061_v22, %v743_v7  ;;  %v897_v12 = vpop.f32.mrb[7].mxu1 }
  0xf3   : > { %v1768_v13 = vpack.c.bf16 %v2140_v3, %v2140_v3  ;;  %v2154_v14 = vmax.f32 %v895_v4, 0.0  ;;  %v2156_v15 = vmax.f32 %v752_v5, 0.0  ;;  %v898_v16 = vadd.f32 %v2061_v22, %v897_v12 }
  0xf4   : > { %v1776_v17 = vpack.c.bf16 %v2146_v8, %v2146_v8  ;;  %v1269_v18 = vsub.f32 %v2140_v3, %v2146_v8  ;;  %v1766_v19 = vpack.c.bf16 %v2148_v9, %v2148_v9  ;;  %v2165_v20 = vmax.f32 %v906_v10, 0.0 }
  0xf5   : > { %802 = vst.msk [vmem:[%s2074_s28 + $0x18] sm:$0xf] %vm795_vm3, %v1768_v13  ;;  %v1774_v21 = vpack.c.bf16 %v2154_v14, %v2154_v14  ;;  %v1267_v23 = vsub.f32 %v2148_v9, %v2154_v14  ;;  %v1769_v24 = vpack.c.bf16 %v2156_v15, %v2156_v15  ;;  %v2175_v25 = vmax.f32 %v744_v11, 0.0 }
  0xf6   : > { %955 = vst.msk [vmem:[%s2088_s12 + $0x18] sm:$0xf] %vm795_vm3, %v1776_v17  ;;  %800 = vst.msk [vmem:[%s2074_s28 + $0x10] sm:$0xf] %vm795_vm3, %v1766_v19  ;;  %v1777_v26 = vpack.c.bf16 %v2165_v20, %v2165_v20  ;;  %v1270_v27 = vsub.f32 %v2156_v15, %v2165_v20  ;;  %v2185_v28 = vmax.f32 %v898_v16, 0.0  ;;  %v1848_v29 = vpop.f32.mrb[8].mxu0 }
  0xf7   : > { %953 = vst.msk [vmem:[%s2088_s12 + $0x10] sm:$0xf] %vm795_vm3, %v1774_v21  ;;  %803 = vst.msk [vmem:[%s2074_s28 + $0x1c] sm:$0xf] %vm795_vm3, %v1769_v24  ;;  %v1767_v30 = vpack.c.bf16 %v2175_v25, %v2175_v25  ;;  %v1040_v32 = vadd.f32 %v1848_v29, %v2061_v22  ;;  %v1860_v33 = vpop.f32.mrb[8].mxu1  ;;  %v1031_v34 = vpop.f32.mrb[9].mxu0 }
  0xf8   : > { %956 = vst.msk [vmem:[%s2088_s12 + $0x1c] sm:$0xf] %vm795_vm3, %v1777_v26  ;;  %v1775_v35 = vpack.c.bf16 %v2185_v28, %v2185_v28  ;;  %v1268_v38 = vsub.f32 %v2175_v25, %v2185_v28  ;;  %v1193_v39 = vadd.f32 %v1860_v33, %v2061_v22  ;;  %v1032_v40 = vadd.f32 %v2061_v22, %v1031_v34  ;;  %v1184_v41 = vpop.f32.mrb[9].mxu1  ;;  %v1849_v44 = vpop.f32.mrb[10].mxu0 }
  0xf9   : > { %801 = vst.msk [vmem:[%s2074_s28 + $0x14] sm:$0xf] %vm795_vm3, %v1767_v30  ;;  %v1064_v45 = vmax.f32 %v1040_v32, 0.0  ;;  %v1185_v47 = vadd.f32 %v2061_v22, %v1184_v41  ;;  %v1043_v49 = vadd.f32 %v1849_v44, %v2061_v22  ;;  %v1861_v51 = vpop.f32.mrb[10].mxu1  ;;  %v1034_v53 = vpop.f32.mrb[11].mxu0 }
  0xfa   : > { %954 = vst.msk [vmem:[%s2088_s12 + $0x14] sm:$0xf] %vm795_vm3, %v1775_v35  ;;  %v1217_v56 = vmax.f32 %v1193_v39, 0.0  ;;  %v1062_v57 = vmax.f32 %v1032_v40, 0.0  ;;  %v1196_v58 = vadd.f32 %v1861_v51, %v2061_v22  ;;  %v1035_v59 = vadd.f32 %v2061_v22, %v1034_v53  ;;  %v1187_v60 = vpop.f32.mrb[11].mxu1 }
  0xfb   : > { %v1780_v61 = vpack.c.bf16 %v1064_v45, %v1064_v45  ;;  %v1215_v63 = vmax.f32 %v1185_v47, 0.0  ;;  %v1065_v0 = vmax.f32 %v1043_v49, 0.0  ;;  %v1188_v1 = vadd.f32 %v2061_v22, %v1187_v60 }
  0xfc   : > { %v1788_v2 = vpack.c.bf16 %v1217_v56, %v1217_v56  ;;  %v1273_v4 = vsub.f32 %v1064_v45, %v1217_v56  ;;  %v1778_v5 = vpack.c.bf16 %v1062_v57, %v1062_v57  ;;  %v1218_v6 = vmax.f32 %v1196_v58, 0.0 }
  0xfd   : > { %1104 = vst.msk [vmem:[%s2212_s15 + $0x8] sm:$0xf] %vm795_vm3, %v1780_v61  ;;  %v1786_v7 = vpack.c.bf16 %v1215_v63, %v1215_v63  ;;  %v1271_v10 = vsub.f32 %v1062_v57, %v1215_v63  ;;  %v1781_v11 = vpack.c.bf16 %v1065_v0, %v1065_v0  ;;  %v1063_v12 = vmax.f32 %v1035_v59, 0.0 }
  0xfe   : > { %1257 = vst.msk [vmem:[%s2220_s22 + $0x8] sm:$0xf] %vm795_vm3, %v1788_v2  ;;  %v1281_v13 = vsub.f32 %v1265_v46, %v1273_v4  ;;  %1102 = vst.msk [vmem:[%s2212_s15] sm:$0xf] %vm795_vm3, %v1778_v5  ;;  %v1789_v16 = vpack.c.bf16 %v1218_v6, %v1218_v6  ;;  %v1274_v17 = vsub.f32 %v1065_v0, %v1218_v6  ;;  %v1216_v19 = vmax.f32 %v1188_v1, 0.0  ;;  %v1852_v21 = vpop.f32.mrb[12].mxu0 }
  0xff   : > { %1255 = vst.msk [vmem:[%s2220_s22] sm:$0xf] %vm795_vm3, %v1786_v7  ;;  %v1279_v24 = vsub.f32 %v1263_v50, %v1271_v10  ;;  %1105 = vst.msk [vmem:[%s2212_s15 + $0xc] sm:$0xf] %vm795_vm3, %v1781_v11  ;;  %v1779_v26 = vpack.c.bf16 %v1063_v12, %v1063_v12  ;;  %v1056_v29 = vadd.f32 %v1852_v21, %v2061_v22  ;;  %v1864_v31 = vpop.f32.mrb[12].mxu1  ;;  %v1047_v36 = vpop.f32.mrb[13].mxu0 }
 0x100   : > { %v1289_v46 = vmul.f32 %v1281_v13, %v1281_v13  ;;  %1258 = vst.msk [vmem:[%s2220_s22 + $0xc] sm:$0xf] %vm795_vm3, %v1789_v16  ;;  %v1282_v30 = vsub.f32 %v1266_v54, %v1274_v17  ;;  %v1787_v32 = vpack.c.bf16 %v1216_v19, %v1216_v19  ;;  %v1272_v33 = vsub.f32 %v1063_v12, %v1216_v19  ;;  %v1200_v37 = vpop.f32.mrb[13].mxu1  ;;  %v1853_v42 = vpop.f32.mrb[14].mxu0  ;;  %v2248_v50 = vld [vmem:[%s2327_s6] ss:$0 sm:$0xff] }
 0x101   : > { %v1287_v34 = vmul.f32 %v1279_v24, %v1279_v24  ;;  %1103 = vst.msk [vmem:[%s2212_s15 + $0x4] sm:$0xf] %vm795_vm3, %v1779_v26  ;;  %v1068_v35 = vmax.f32 %v1056_v29, 0.0  ;;  %v1209_v39 = vadd.f32 %v1864_v31, %v2061_v22  ;;  %v1048_v40 = vadd.f32 %v2061_v22, %v1047_v36  ;;  %v1865_v43 = vpop.f32.mrb[14].mxu1  ;;  %v1050_v48 = vpop.f32.mrb[15].mxu0 }
 0x102   : > { %1256 = vst.msk [vmem:[%s2220_s22 + $0x4] sm:$0xf] %vm795_vm3, %v1787_v32  ;;  %v1280_v54 = vsub.f32 %v1264_v62, %v1272_v33  ;;  %v1201_v41 = vadd.f32 %v2061_v22, %v1200_v37  ;;  %v1203_v44 = vpop.f32.mrb[15].mxu1  ;;  %v1304_v51 = vmul.f32 %v2248_v50, %v1289_v46  ;;  %v1290_v58 = vmul.f32 %v1282_v30, %v1282_v30 }
 0x103   : > { %v1784_v45 = vpack.c.bf16 %v1068_v35, %v1068_v35  ;;  %v1221_v47 = vmax.f32 %v1209_v39, 0.0  ;;  %v1066_v49 = vmax.f32 %v1048_v40, 0.0  ;;  %v1302_v53 = vmul.f32 %v2248_v50, %v1287_v34 }
 0x104   : > { %v1288_v56 = vmul.f32 %v1280_v54, %v1280_v54  ;;  %v1219_v57 = vmax.f32 %v1201_v41, 0.0  ;;  %v1059_v63 = vadd.f32 %v1853_v42, %v2061_v22  ;;  %v1212_v1 = vadd.f32 %v1865_v43, %v2061_v22 }
 0x105   : > { %1108 = vst.msk [vmem:[%s2212_s15 + $0x18] sm:$0xf] %vm795_vm3, %v1784_v45  ;;  %v1792_v52 = vpack.c.bf16 %v1221_v47, %v1221_v47  ;;  %v1277_v55 = vsub.f32 %v1068_v35, %v1221_v47  ;;  %v1782_v62 = vpack.c.bf16 %v1066_v49, %v1066_v49  ;;  %v1051_v2 = vadd.f32 %v2061_v22, %v1050_v48 }
 0x106   : > { %v1303_v59 = vmul.f32 %v2248_v50, %v1288_v56  ;;  %v1790_v60 = vpack.c.bf16 %v1219_v57, %v1219_v57  ;;  %v1275_v61 = vsub.f32 %v1066_v49, %v1219_v57  ;;  %v1204_v4 = vadd.f32 %v2061_v22, %v1203_v44 }
 0x107   : > { %1261 = vst.msk [vmem:[%s2220_s22 + $0x18] sm:$0xf] %vm795_vm3, %v1792_v52  ;;  %v1285_v0 = vsub.f32 %v1269_v18, %v1277_v55  ;;  %1106 = vst.msk [vmem:[%s2212_s15 + $0x10] sm:$0xf] %vm795_vm3, %v1782_v62  ;;  %v1311_v5 = vsel %vm1310_vm4, %v1302_v53, 0.0  ;;  %v1069_v8 = vmax.f32 %v1059_v63, 0.0  ;;  %v1305_v18 = vmul.f32 %v2248_v50, %v1290_v58 }
 0x108   : > { %v1312_v6 = vsel %vm1310_vm4, %v1303_v59, 0.0  ;;  %1259 = vst.msk [vmem:[%s2220_s22 + $0x10] sm:$0xf] %vm795_vm3, %v1790_v60  ;;  %v1283_v3 = vsub.f32 %v1267_v23, %v1275_v61  ;;  %v1222_v10 = vmax.f32 %v1212_v1, 0.0  ;;  %v1067_v11 = vmax.f32 %v1051_v2, 0.0 }
 0x109   : > { %v1313_v7 = vadd.f32 %v1312_v6, %v1311_v5  ;;  %v1785_v12 = vpack.c.bf16 %v1069_v8, %v1069_v8  ;;  %v1220_v13 = vmax.f32 %v1204_v4, 0.0  ;;  %v1314_v16 = vsel %vm1310_vm4, %v1304_v51, 0.0 }
 0x10a   : > { %v1291_v22 = vmul.f32 %v1283_v3, %v1283_v3  ;;  %v1793_v17 = vpack.c.bf16 %v1222_v10, %v1222_v10  ;;  %v1278_v19 = vsub.f32 %v1069_v8, %v1222_v10  ;;  %v1783_v21 = vpack.c.bf16 %v1067_v11, %v1067_v11 }
 0x10b   : > { %1109 = vst.msk [vmem:[%s2212_s15 + $0x1c] sm:$0xf] %vm795_vm3, %v1785_v12  ;;  %v1791_v14 = vpack.c.bf16 %v1220_v13, %v1220_v13  ;;  %v1276_v23 = vsub.f32 %v1067_v11, %v1220_v13  ;;  %v1315_v24 = vadd.f32 %v1314_v16, %v1313_v7  ;;  %v1316_v29 = vsel %vm1310_vm4, %v1305_v18, 0.0 }
 0x10c   : > { %v1306_v9 = vmul.f32 %v2248_v50, %v1291_v22  ;;  %1262 = vst.msk [vmem:[%s2220_s22 + $0x1c] sm:$0xf] %vm795_vm3, %v1793_v17  ;;  %v1286_v26 = vsub.f32 %v1270_v27, %v1278_v19  ;;  %1107 = vst.msk [vmem:[%s2212_s15 + $0x14] sm:$0xf] %vm795_vm3, %v1783_v21  ;;  %v1293_v31 = vmul.f32 %v1285_v0, %v1285_v0 }
 0x10d   : > { %1260 = vst.msk [vmem:[%s2220_s22 + $0x14] sm:$0xf] %vm795_vm3, %v1791_v14  ;;  %v1284_v36 = vsub.f32 %v1268_v38, %v1276_v23  ;;  %v1317_v46 = vadd.f32 %v1316_v29, %v1315_v24 }
 0x10e   : > { %v1318_v30 = vsel %vm1310_vm4, %v1306_v9, 0.0  ;;  %v1294_v33 = vmul.f32 %v1286_v26, %v1286_v26  ;;  %v1308_v20 = vmul.f32 %v2248_v50, %v1293_v31 }
 0x10f   : > { %v1292_v32 = vmul.f32 %v1284_v36, %v1284_v36  ;;  %v1319_v37 = vadd.f32 %v1318_v30, %v1317_v46 }
 0x110   : > { %v1309_v27 = vmul.f32 %v2248_v50, %v1294_v33  ;;  %v1322_v35 = vsel %vm1310_vm4, %v1308_v20, 0.0 }
 0x111   : > { %v1307_v15 = vmul.f32 %v2248_v50, %v1292_v32 }
 0x112   : > { %v1324_v28 = vsel %vm1310_vm4, %v1309_v27, 0.0 }
 0x113   : > { %v1320_v42 = vsel %vm1310_vm4, %v1307_v15, 0.0 }
 0x114   : > { %v1321_v34 = vadd.f32 %v1320_v42, %v1319_v37 }
 0x116   : > { %v1323_v25 = vadd.f32 %v1322_v35, %v1321_v34 }
 0x118   : > { %v1325_v38 = vadd.f32 %v1324_v28, %v1323_v25 }
 0x11a   : > { %1326 = vadd.xlane.f32.xlu0 %v1325_v38 }
 0x1a7   : > { %v1327_v39 = vpop.xlane.xlu0 %1326 }
 0x1a8   : > { %v1328_v40 = vrot.slane %v1327_v39, 4 }
 0x1aa   : > { %v1329_v43 = vadd.f32 %v1328_v40, %v1327_v39 }
 0x1ac   : > { %v1330_v48 = vrot.slane %v1329_v43, 2 }
 0x1ae   : > { %v1331_v54 = vadd.f32 %v1330_v48, %v1329_v43 }
 0x1b0   : > { %v1332_v41 = vrot.slane %v1331_v54, 1 }
 0x1b2   : > { %v1333_v44 = vadd.f32 %v1332_v41, %v1331_v54 }
 0x1b4   : > { %1866 = vpush %v1333_v44 }
 0x1e5   : > { %s1867_s26 = spop %1866 }
 0x1e6   : > { %v1335_v50 = vstv %s1867_s26 }
 0x1e7   : > { %v1337_v45 = vmul.f32 0.015625, %v1335_v50 }
 0x1e9   : > { %1339 = vst [vmem:[%s613_s29] sm:$0xff] %v1337_v45 }
 0x1ea PF: > { %s22_s19 = sadd.s32 1, %s1934_s19   ;;  %s2333_s17 = smov %s1930_s18 }
 0x1eb   : > { %p19_p5 = scmp.ge.s32.totalorder %s22_s19, 4   ;;  %s2334_s18 = smov %s2336_s20 }
 0x1ed   :  { %21 = sbr.rel (!%p19_p5) target bundleno = 2 (0x2), region = 139 }

</bundles_post_ra>
